<compile_context>
chip_gen: v6e
topology: v6e:2x2x1
jax: 0.10.0
libtpu: 0.0.40
codegen_flags: <defaults>
</compile_context>

<pallas_src>
import jax
import jax.numpy as jnp
from jax.experimental import pallas as pl
from jax.experimental.pallas import tpu as pltpu

_SQRT_HALF = 0.7071067811865476


# ------------------------------ Pallas kernel -------------------------------

def _resmlp_layer_kernel(
    x_ref,                 # (N, TB*D) bf16 tokens, patch-major, batch folded into lanes
    wp_ref,                # (N, N)   bf16 cross-patch weight
    aw_ref, kw_ref,        # (1, TB*D) f32 scale A, (N, TB*D) f32 bias K (affines+bp folded)
    w1_ref, b1_ref,        # (D, H) bf16 (a3 folded), (1, H) f32 (c3 folded)
    w2_ref, b2_ref,        # (H, D) bf16 (ls*a4 folded), (1, D) f32 (ls*(a4*b2+c4))
    o_ref,                 # (N, TB*D) f32 output
):
    N, TBD = x_ref.shape
    D = b2_ref.shape[-1]
    TB = TBD // D

    # ---- cross-patch sublayer: y = A * (Wp @ x) + K  (one lane-dense MXU matmul) ----
    raw = jnp.dot(wp_ref[...], x_ref[...], preferred_element_type=jnp.float32)
    y = aw_ref[...] * raw + kw_ref[...]                       # (N, TB*D) f32

    # ---- cross-channel sublayer (residual); all affines / layerscale pre-folded ----
    y_tok = y.reshape(N * TB, D)                              # token-major view
    h = jnp.dot(y_tok.astype(jnp.bfloat16), w1_ref[...],
                preferred_element_type=jnp.float32) + b1_ref[...]
    # Exact erf-based GELU, matching nn.GELU() default numerics.
    # TODO(synk): tanh-approx GELU would land on the EUP slot but changes numerics.
    h = 0.5 * h * (1.0 + jax.lax.erf(h * jnp.float32(_SQRT_HALF)))
    m = jnp.dot(h.astype(jnp.bfloat16), w2_ref[...],
                preferred_element_type=jnp.float32) + b2_ref[...]
    # TODO(synk): for very large H on 64 MiB (v7x) parts, chunk this MLP over H.
    o_ref[...] = (y_tok + m).reshape(N, TB * D).astype(o_ref.dtype)


# ------------------------------ Host wrapper ---------------------------------

def _vmem_capacity_bytes():
    try:
        return int(pltpu.get_tpu_info().vmem_capacity_bytes)
    except Exception:
        return 64 << 20   # conservative default (v7x per-TC VMEM)


def _pick_batch_tile(B, N, D, H, budget_bytes):
    """Largest batch tile dividing B that fits the budget, keeps >=2 grid steps,
    and prefers M = TB*N aligned to 256 (v6e/v7x MXU) / 128 (v5e)."""
    bf16, f32 = 2, 4

    def estimate(tb):
        blk = N * tb * D
        resident = (N * N * bf16 + tb * D * f32 + N * tb * D * f32      # wp, A, K
                    + D * H * bf16 + H * f32 + H * D * bf16 + D * f32)   # w1,b1,w2,b2
        io = 2 * blk * bf16 + 2 * blk * f32                              # double-buffered x / out
        inter = N * tb * H * (f32 + bf16) + 3 * blk * f32 + blk * bf16   # h, y/y_tok/m, casts
        # 2x resident stays safe if single-buffering is unavailable in this JAX build.
        return io + 2 * resident + inter

    best = None
    for tb in range(1, B + 1):
        if B % tb:
            continue
        steps = B // tb
        if B >= 2 and steps < 2:          # keep >=2 grid steps (v7x megacore / DMA overlap)
            continue
        if estimate(tb) > budget_bytes:
            continue
        m_rows = tb * N
        score = (m_rows % 256 == 0, m_rows % 128 == 0, steps % 2 == 0, tb)
        if best is None or score > best[1]:
            best = (tb, score)
    return best[0] if best is not None else 1


def resmlp_layer(x, params, *, batch_tile=None, interpret=False):
    """Fused ResMLPLayer forward.  x: (B, N, D) float32 tokens."""
    B, N, D = x.shape
    H = params["w1t"].shape[1]
    assert D % 128 == 0 and N % 8 == 0, "dim must be a multiple of 128, num_patches of 8"

    vmem_cap = _vmem_capacity_bytes()
    vmem_limit = max(32 << 20, min(int(0.8 * vmem_cap), vmem_cap - (16 << 20)))
    TB = batch_tile or _pick_batch_tile(B, N, D, H, int(0.7 * vmem_limit))
    assert B % TB == 0, f"batch tile {TB} must divide batch {B}"

    # ---- fold affines, patch bias and layerscale into weights/biases ----
    ls = params["ls"].reshape(())
    a1, c1, a2, c2 = params["a1"], params["c1"], params["a2"], params["c2"]
    a3, c3, a4, c4 = params["a3"], params["c3"], params["a4"], params["c4"]
    wp, bp = params["wp"], params["bp"]
    w1t, b1 = params["w1t"], params["b1"]
    w2t, b2 = params["w2t"], params["b2"]

    A = a1 * a2                                          # (1, D)
    rs = jnp.sum(wp, axis=1, keepdims=True)              # (N, 1)  rowsum(Wp)
    K = a2 * (rs * c1 + bp) + c2                         # (N, D)
    w1f = a3.reshape(D, 1) * w1t                         # (D, H)
    b1f = b1 + c3 @ w1t                                  # (1, H)
    w2f = w2t * (ls * a4)                                # (H, D)
    b2f = ls * (a4 * b2 + c4)                            # (1, D)

    wp_bf = wp.astype(jnp.bfloat16)
    w1_bf = w1f.astype(jnp.bfloat16)
    w2_bf = w2f.astype(jnp.bfloat16)
    A_wide = jnp.tile(A, (1, TB))                        # (1, TB*D)
    K_wide = jnp.tile(K, (1, TB))                        # (N, TB*D)

    # ---- wrapper-level layout: patch axis leading, batch folded into lanes ----
    x_wide = jnp.transpose(x, (1, 0, 2)).reshape(N, B * D).astype(jnp.bfloat16)

    grid = (B // TB,)

    def run(single_buffer):
        def resident(shape):
            zeros = (0,) * len(shape)
            if single_buffer:
                return pl.BlockSpec(shape, lambda g: zeros, pipeline_mode=pl.Buffered(1))
            return pl.BlockSpec(shape, lambda g: zeros)

        in_specs = [
            pl.BlockSpec((N, TB * D), lambda g: (0, g)),     # x, tiled over batch chunks
            resident((N, N)),                                # Wp
            resident((1, TB * D)), resident((N, TB * D)),    # A, K (pre-tiled, lane-dense)
            resident((D, H)), resident((1, H)),              # w1', b1'
            resident((H, D)), resident((1, D)),              # w2', b2'
        ]
        out_specs = pl.BlockSpec((N, TB * D), lambda g: (0, g))
        return pl.pallas_call(
            _resmlp_layer_kernel,
            out_shape=jax.ShapeDtypeStruct((N, B * D), jnp.float32),
            grid_spec=pl.GridSpec(grid=grid, in_specs=in_specs, out_specs=out_specs),
            compiler_params=pltpu.CompilerParams(
                dimension_semantics=("parallel",),
                vmem_limit_bytes=vmem_limit,
            ),
            interpret=interpret,
        )(x_wide, wp_bf, A_wide, K_wide, w1_bf, b1f, w2_bf, b2f)

    try:
        out_wide = run(single_buffer=True)
    except Exception:
        # pl.Buffered(1) not accepted by this JAX build -> default double buffering.
        out_wide = run(single_buffer=False)

    return jnp.transpose(out_wide.reshape(N, B, D), (1, 0, 2))


# ------------------------------ Params & reference ---------------------------

def init_layer_params(key, *, num_patches, dim, depth=12, expansion_factor=4):
    N, D, E = num_patches, dim, expansion_factor
    H = E * D
    if depth <= 18:
        layerscale = 0.1
    elif depth <= 24:
        layerscale = 1e-5
    else:
        layerscale = 1e-6

    def nrm(k, shape, scale=0.05):
        return scale * jax.random.normal(k, shape, dtype=jnp.float32)

    k = jax.random.split(key, 12)
    return {
        "a1": 1.0 + nrm(k[0], (1, D)), "c1": nrm(k[1], (1, D)),
        # nn.Linear(num_patches, num_patches): weight (N, N), bias (N,) kept as (N, 1)
        "wp": nrm(k[2], (N, N)),       "bp": nrm(k[3], (N, 1)),
        "a2": 1.0 + nrm(k[4], (1, D)), "c2": nrm(k[5], (1, D)),
        "a3": 1.0 + nrm(k[6], (1, D)), "c3": nrm(k[7], (1, D)),
        # nn.Linear(D, H) weight is (H, D) in PyTorch; pre-transposed to (D, H)
        "w1t": nrm(k[8], (H, D)).T,    "b1": nrm(k[9], (1, H)),
        # nn.Linear(H, D) weight is (D, H) in PyTorch; pre-transposed to (H, D)
        "w2t": nrm(k[10], (D, H)).T,   "b2": nrm(k[11], (1, D)),
        "a4": 1.0 + nrm(jax.random.fold_in(k[0], 7), (1, D)),
        "c4": nrm(jax.random.fold_in(k[1], 7), (1, D)),
        "ls": jnp.full((1, 1), layerscale, dtype=jnp.float32),
    }


def resmlp_layer_reference(x, params):
    """Pure-JAX f32 (HIGHEST precision) reference of the PyTorch ResMLPLayer forward."""
    hp = jax.lax.Precision.HIGHEST
    ls = params["ls"].reshape(())
    t = params["a1"] * x + params["c1"]
    z = jnp.einsum('nm,bmd->bnd', params["wp"], t, precision=hp) + params["bp"]
    y = params["a2"] * z + params["c2"]                 # cross-patch out (no residual)
    u = params["a3"] * y + params["c3"]
    h = jnp.einsum('bnd,dh->bnh', u, params["w1t"], precision=hp) + params["b1"]
    h = 0.5 * h * (1.0 + jax.lax.erf(h * jnp.float32(_SQRT_HALF)))
    m = jnp.einsum('bnh,hd->bnd', h, params["w2t"], precision=hp) + params["b2"]
    return y + ls * (params["a4"] * m + params["c4"])


# --------------------------------- main --------------------------------------

if __name__ == "__main__":
    # D multiple of 128 (lane-dense), N multiple of 8, B big enough for >=2 grid steps.
    B, N, D, E = 8, 16, 128, 4

    key = jax.random.PRNGKey(0)
    kx, kp = jax.random.split(key)
    x = jax.random.normal(kx, (B, N, D), dtype=jnp.float32)
    params = init_layer_params(kp, num_patches=N, dim=D, depth=12, expansion_factor=E)

    out = resmlp_layer(x, params)
    out = jax.block_until_ready(out)
    assert out.shape == (B, N, D)
    assert bool(jnp.all(jnp.isfinite(out)))

    # Tolerance relaxed vs the f32 HIGHEST reference because MXU operands are bf16.
    ref = resmlp_layer_reference(x, params)
    err = float(jnp.max(jnp.abs(out - ref)))
    assert err < 5e-2, f"mismatch vs reference: max abs err = {err}"

    print("KERNEL_OK")
</pallas_src>

<mosaic_0001>
module attributes {stable_mosaic.version = 11 : i64} {
  func.func @_resmlp_layer_kernel(%arg0: i32, %arg1: memref<16x512xbf16, #tpu.memory_space<vmem>>, %arg2: memref<16x16xbf16, #tpu.memory_space<vmem>>, %arg3: memref<1x512xf32, #tpu.memory_space<vmem>>, %arg4: memref<16x512xf32, #tpu.memory_space<vmem>>, %arg5: memref<128x512xbf16, #tpu.memory_space<vmem>>, %arg6: memref<1x512xf32, #tpu.memory_space<vmem>>, %arg7: memref<512x128xbf16, #tpu.memory_space<vmem>>, %arg8: memref<1x128xf32, #tpu.memory_space<vmem>>, %arg9: memref<16x512xf32, #tpu.memory_space<vmem>>) attributes {dimension_semantics = [#tpu.dimension_semantics<parallel>], iteration_bounds = array<i64: 2>, scalar_prefetch = 0 : i64, scratch_operands = 0 : i64, tpu.core_type = #tpu.core_type<tc>, window_params = [{transform_indices = @transform_0, window_bounds = array<i64: 16, 512>}, {pipeline_mode = #tpu.pipeline_mode<synchronous>, transform_indices = @transform_1, window_bounds = array<i64: 16, 16>}, {pipeline_mode = #tpu.pipeline_mode<synchronous>, transform_indices = @transform_2, window_bounds = array<i64: 1, 512>}, {pipeline_mode = #tpu.pipeline_mode<synchronous>, transform_indices = @transform_3, window_bounds = array<i64: 16, 512>}, {pipeline_mode = #tpu.pipeline_mode<synchronous>, transform_indices = @transform_4, window_bounds = array<i64: 128, 512>}, {pipeline_mode = #tpu.pipeline_mode<synchronous>, transform_indices = @transform_5, window_bounds = array<i64: 1, 512>}, {pipeline_mode = #tpu.pipeline_mode<synchronous>, transform_indices = @transform_6, window_bounds = array<i64: 512, 128>}, {pipeline_mode = #tpu.pipeline_mode<synchronous>, transform_indices = @transform_7, window_bounds = array<i64: 1, 128>}, {transform_indices = @transform_8, window_bounds = array<i64: 16, 512>}]} {
    %c0 = arith.constant 0 : index
    %c0_0 = arith.constant 0 : index
    %0 = vector.load %arg2[%c0, %c0_0] : memref<16x16xbf16, #tpu.memory_space<vmem>>, vector<16x16xbf16>
    %c0_1 = arith.constant 0 : index
    %c0_2 = arith.constant 0 : index
    %1 = vector.load %arg1[%c0_1, %c0_2] : memref<16x512xbf16, #tpu.memory_space<vmem>>, vector<16x512xbf16>
    %cst = arith.constant dense<0.000000e+00> : vector<16x512xf32>
    %2 = tpu.matmul %0, %1, %cst {dimension_numbers = #tpu.dot_dimension_numbers<[1], [0], [0], [1], [0, 0, 1, 1], [], []>} : vector<16x16xbf16>, vector<16x512xbf16>, vector<16x512xf32> -> vector<16x512xf32>
    %c0_3 = arith.constant 0 : index
    %c0_4 = arith.constant 0 : index
    %3 = vector.load %arg3[%c0_3, %c0_4] : memref<1x512xf32, #tpu.memory_space<vmem>>, vector<1x512xf32>
    %4 = vector.broadcast %3 : vector<1x512xf32> to vector<16x512xf32>
    %5 = arith.mulf %4, %2 : vector<16x512xf32>
    %c0_5 = arith.constant 0 : index
    %c0_6 = arith.constant 0 : index
    %6 = vector.load %arg4[%c0_5, %c0_6] : memref<16x512xf32, #tpu.memory_space<vmem>>, vector<16x512xf32>
    %7 = arith.addf %5, %6 : vector<16x512xf32>
    %8 = vector.shape_cast %7 : vector<16x512xf32> to vector<64x128xf32>
    %9 = arith.truncf %8 : vector<64x128xf32> to vector<64x128xbf16>
    %c0_7 = arith.constant 0 : index
    %c0_8 = arith.constant 0 : index
    %10 = vector.load %arg5[%c0_7, %c0_8] : memref<128x512xbf16, #tpu.memory_space<vmem>>, vector<128x512xbf16>
    %cst_9 = arith.constant dense<0.000000e+00> : vector<64x512xf32>
    %11 = tpu.matmul %9, %10, %cst_9 {dimension_numbers = #tpu.dot_dimension_numbers<[1], [0], [0], [1], [0, 0, 1, 1], [], []>} : vector<64x128xbf16>, vector<128x512xbf16>, vector<64x512xf32> -> vector<64x512xf32>
    %c0_10 = arith.constant 0 : index
    %c0_11 = arith.constant 0 : index
    %12 = vector.load %arg6[%c0_10, %c0_11] : memref<1x512xf32, #tpu.memory_space<vmem>>, vector<1x512xf32>
    %13 = vector.broadcast %12 : vector<1x512xf32> to vector<64x512xf32>
    %14 = arith.addf %11, %13 : vector<64x512xf32>
    %cst_12 = arith.constant 5.000000e-01 : f32
    %15 = vector.broadcast %cst_12 : f32 to vector<64x512xf32>
    %16 = arith.mulf %15, %14 : vector<64x512xf32>
    %cst_13 = arith.constant 0.707106769 : f32
    %17 = vector.broadcast %cst_13 : f32 to vector<64x512xf32>
    %18 = arith.mulf %14, %17 : vector<64x512xf32>
    %19 = math.erf %18 : vector<64x512xf32>
    %cst_14 = arith.constant 1.000000e+00 : f32
    %20 = vector.broadcast %cst_14 : f32 to vector<64x512xf32>
    %21 = arith.addf %20, %19 : vector<64x512xf32>
    %22 = arith.mulf %16, %21 : vector<64x512xf32>
    %23 = arith.truncf %22 : vector<64x512xf32> to vector<64x512xbf16>
    %c0_15 = arith.constant 0 : index
    %c0_16 = arith.constant 0 : index
    %24 = vector.load %arg7[%c0_15, %c0_16] : memref<512x128xbf16, #tpu.memory_space<vmem>>, vector<512x128xbf16>
    %cst_17 = arith.constant dense<0.000000e+00> : vector<64x128xf32>
    %25 = tpu.matmul %23, %24, %cst_17 {dimension_numbers = #tpu.dot_dimension_numbers<[1], [0], [0], [1], [0, 0, 1, 1], [], []>} : vector<64x512xbf16>, vector<512x128xbf16>, vector<64x128xf32> -> vector<64x128xf32>
    %c0_18 = arith.constant 0 : index
    %c0_19 = arith.constant 0 : index
    %26 = vector.load %arg8[%c0_18, %c0_19] : memref<1x128xf32, #tpu.memory_space<vmem>>, vector<1x128xf32>
    %27 = vector.broadcast %26 : vector<1x128xf32> to vector<64x128xf32>
    %28 = arith.addf %25, %27 : vector<64x128xf32>
    %29 = arith.addf %8, %28 : vector<64x128xf32>
    %30 = vector.shape_cast %29 : vector<64x128xf32> to vector<16x512xf32>
    %c0_20 = arith.constant 0 : index
    %c0_21 = arith.constant 0 : index
    %31 = vector.load %arg9[%c0_20, %c0_21] : memref<16x512xf32, #tpu.memory_space<vmem>>, vector<16x512xf32>
    tpu.vector_store %arg9[%c0_20, %c0_21], %30 {strides = array<i32>} : memref<16x512xf32, #tpu.memory_space<vmem>>, vector<16x512xf32>,
    return
  }
  func.func @transform_0(%arg0: i32) -> (i32, i32) {
    %c0_i32 = arith.constant 0 : i32
    %c0_i32_0 = arith.constant 0 : i32
    return %c0_i32, %arg0 : i32, i32
  }
  func.func @transform_1(%arg0: i32) -> (i32, i32) {
    %c0_i32 = arith.constant 0 : i32
    %c0_i32_0 = arith.constant 0 : i32
    %c0_i32_1 = arith.constant 0 : i32
    return %c0_i32, %c0_i32_0 : i32, i32
  }
  func.func @transform_2(%arg0: i32) -> (i32, i32) {
    %c0_i32 = arith.constant 0 : i32
    %c0_i32_0 = arith.constant 0 : i32
    %c0_i32_1 = arith.constant 0 : i32
    return %c0_i32, %c0_i32_0 : i32, i32
  }
  func.func @transform_3(%arg0: i32) -> (i32, i32) {
    %c0_i32 = arith.constant 0 : i32
    %c0_i32_0 = arith.constant 0 : i32
    %c0_i32_1 = arith.constant 0 : i32
    return %c0_i32, %c0_i32_0 : i32, i32
  }
  func.func @transform_4(%arg0: i32) -> (i32, i32) {
    %c0_i32 = arith.constant 0 : i32
    %c0_i32_0 = arith.constant 0 : i32
    %c0_i32_1 = arith.constant 0 : i32
    return %c0_i32, %c0_i32_0 : i32, i32
  }
  func.func @transform_5(%arg0: i32) -> (i32, i32) {
    %c0_i32 = arith.constant 0 : i32
    %c0_i32_0 = arith.constant 0 : i32
    %c0_i32_1 = arith.constant 0 : i32
    return %c0_i32, %c0_i32_0 : i32, i32
  }
  func.func @transform_6(%arg0: i32) -> (i32, i32) {
    %c0_i32 = arith.constant 0 : i32
    %c0_i32_0 = arith.constant 0 : i32
    %c0_i32_1 = arith.constant 0 : i32
    return %c0_i32, %c0_i32_0 : i32, i32
  }
  func.func @transform_7(%arg0: i32) -> (i32, i32) {
    %c0_i32 = arith.constant 0 : i32
    %c0_i32_0 = arith.constant 0 : i32
    %c0_i32_1 = arith.constant 0 : i32
    return %c0_i32, %c0_i32_0 : i32, i32
  }
  func.func @transform_8(%arg0: i32) -> (i32, i32) {
    %c0_i32 = arith.constant 0 : i32
    %c0_i32_0 = arith.constant 0 : i32
    return %c0_i32, %arg0 : i32, i32
  }
}

module attributes {stable_mosaic.version = 11 : i64} {
  func.func @_resmlp_layer_kernel(%arg0: i32, %arg1: memref<16x512xbf16, #tpu.memory_space<vmem>>, %arg2: memref<16x16xbf16, #tpu.memory_space<vmem>>, %arg3: memref<1x512xf32, #tpu.memory_space<vmem>>, %arg4: memref<16x512xf32, #tpu.memory_space<vmem>>, %arg5: memref<128x512xbf16, #tpu.memory_space<vmem>>, %arg6: memref<1x512xf32, #tpu.memory_space<vmem>>, %arg7: memref<512x128xbf16, #tpu.memory_space<vmem>>, %arg8: memref<1x128xf32, #tpu.memory_space<vmem>>, %arg9: memref<16x512xf32, #tpu.memory_space<vmem>>) attributes {dimension_semantics = [#tpu.dimension_semantics<parallel>], iteration_bounds = array<i64: 2>, scalar_prefetch = 0 : i64, scratch_operands = 0 : i64, tpu.core_type = #tpu.core_type<tc>, window_params = [{transform_indices = @transform_0, window_bounds = array<i64: 16, 512>}, {pipeline_mode = #tpu.pipeline_mode<synchronous>, transform_indices = @transform_1, window_bounds = array<i64: 16, 16>}, {pipeline_mode = #tpu.pipeline_mode<synchronous>, transform_indices = @transform_2, window_bounds = array<i64: 1, 512>}, {pipeline_mode = #tpu.pipeline_mode<synchronous>, transform_indices = @transform_3, window_bounds = array<i64: 16, 512>}, {pipeline_mode = #tpu.pipeline_mode<synchronous>, transform_indices = @transform_4, window_bounds = array<i64: 128, 512>}, {pipeline_mode = #tpu.pipeline_mode<synchronous>, transform_indices = @transform_5, window_bounds = array<i64: 1, 512>}, {pipeline_mode = #tpu.pipeline_mode<synchronous>, transform_indices = @transform_6, window_bounds = array<i64: 512, 128>}, {pipeline_mode = #tpu.pipeline_mode<synchronous>, transform_indices = @transform_7, window_bounds = array<i64: 1, 128>}, {transform_indices = @transform_8, window_bounds = array<i64: 16, 512>}]} {
    %c0 = arith.constant 0 : index
    %c0_0 = arith.constant 0 : index
    %0 = vector.load %arg2[%c0, %c0_0] : memref<16x16xbf16, #tpu.memory_space<vmem>>, vector<16x16xbf16>
    %c0_1 = arith.constant 0 : index
    %c0_2 = arith.constant 0 : index
    %1 = vector.load %arg1[%c0_1, %c0_2] : memref<16x512xbf16, #tpu.memory_space<vmem>>, vector<16x512xbf16>
    %cst = arith.constant dense<0.000000e+00> : vector<16x512xf32>
    %2 = tpu.matmul %0, %1, %cst {dimension_numbers = #tpu.dot_dimension_numbers<[1], [0], [0], [1], [0, 0, 1, 1], [], []>} : vector<16x16xbf16>, vector<16x512xbf16>, vector<16x512xf32> -> vector<16x512xf32>
    %c0_3 = arith.constant 0 : index
    %c0_4 = arith.constant 0 : index
    %3 = vector.load %arg3[%c0_3, %c0_4] : memref<1x512xf32, #tpu.memory_space<vmem>>, vector<1x512xf32>
    %4 = vector.broadcast %3 : vector<1x512xf32> to vector<16x512xf32>
    %5 = arith.mulf %4, %2 : vector<16x512xf32>
    %c0_5 = arith.constant 0 : index
    %c0_6 = arith.constant 0 : index
    %6 = vector.load %arg4[%c0_5, %c0_6] : memref<16x512xf32, #tpu.memory_space<vmem>>, vector<16x512xf32>
    %7 = arith.addf %5, %6 : vector<16x512xf32>
    %8 = vector.shape_cast %7 : vector<16x512xf32> to vector<64x128xf32>
    %9 = arith.truncf %8 : vector<64x128xf32> to vector<64x128xbf16>
    %c0_7 = arith.constant 0 : index
    %c0_8 = arith.constant 0 : index
    %10 = vector.load %arg5[%c0_7, %c0_8] : memref<128x512xbf16, #tpu.memory_space<vmem>>, vector<128x512xbf16>
    %cst_9 = arith.constant dense<0.000000e+00> : vector<64x512xf32>
    %11 = tpu.matmul %9, %10, %cst_9 {dimension_numbers = #tpu.dot_dimension_numbers<[1], [0], [0], [1], [0, 0, 1, 1], [], []>} : vector<64x128xbf16>, vector<128x512xbf16>, vector<64x512xf32> -> vector<64x512xf32>
    %c0_10 = arith.constant 0 : index
    %c0_11 = arith.constant 0 : index
    %12 = vector.load %arg6[%c0_10, %c0_11] : memref<1x512xf32, #tpu.memory_space<vmem>>, vector<1x512xf32>
    %13 = vector.broadcast %12 : vector<1x512xf32> to vector<64x512xf32>
    %14 = arith.addf %11, %13 : vector<64x512xf32>
    %cst_12 = arith.constant 5.000000e-01 : f32
    %15 = vector.broadcast %cst_12 : f32 to vector<64x512xf32>
    %16 = arith.mulf %15, %14 : vector<64x512xf32>
    %cst_13 = arith.constant 0.707106769 : f32
    %17 = vector.broadcast %cst_13 : f32 to vector<64x512xf32>
    %18 = arith.mulf %14, %17 : vector<64x512xf32>
    %19 = math.erf %18 : vector<64x512xf32>
    %cst_14 = arith.constant 1.000000e+00 : f32
    %20 = vector.broadcast %cst_14 : f32 to vector<64x512xf32>
    %21 = arith.addf %20, %19 : vector<64x512xf32>
    %22 = arith.mulf %16, %21 : vector<64x512xf32>
    %23 = arith.truncf %22 : vector<64x512xf32> to vector<64x512xbf16>
    %c0_15 = arith.constant 0 : index
    %c0_16 = arith.constant 0 : index
    %24 = vector.load %arg7[%c0_15, %c0_16] : memref<512x128xbf16, #tpu.memory_space<vmem>>, vector<512x128xbf16>
    %cst_17 = arith.constant dense<0.000000e+00> : vector<64x128xf32>
    %25 = tpu.matmul %23, %24, %cst_17 {dimension_numbers = #tpu.dot_dimension_numbers<[1], [0], [0], [1], [0, 0, 1, 1], [], []>} : vector<64x512xbf16>, vector<512x128xbf16>, vector<64x128xf32> -> vector<64x128xf32>
    %c0_18 = arith.constant 0 : index
    %c0_19 = arith.constant 0 : index
    %26 = vector.load %arg8[%c0_18, %c0_19] : memref<1x128xf32, #tpu.memory_space<vmem>>, vector<1x128xf32>
    %27 = vector.broadcast %26 : vector<1x128xf32> to vector<64x128xf32>
    %28 = arith.addf %25, %27 : vector<64x128xf32>
    %29 = arith.addf %8, %28 : vector<64x128xf32>
    %30 = vector.shape_cast %29 : vector<64x128xf32> to vector<16x512xf32>
    %c0_20 = arith.constant 0 : index
    %c0_21 = arith.constant 0 : index
    %31 = vector.load %arg9[%c0_20, %c0_21] : memref<16x512xf32, #tpu.memory_space<vmem>>, vector<16x512xf32>
    tpu.vector_store %arg9[%c0_20, %c0_21], %30 {strides = array<i32>} : memref<16x512xf32, #tpu.memory_space<vmem>>, vector<16x512xf32>,
    return
  }
  func.func @transform_0(%arg0: i32) -> (i32, i32) {
    %c0_i32 = arith.constant 0 : i32
    %c0_i32_0 = arith.constant 0 : i32
    return %c0_i32, %arg0 : i32, i32
  }
  func.func @transform_1(%arg0: i32) -> (i32, i32) {
    %c0_i32 = arith.constant 0 : i32
    %c0_i32_0 = arith.constant 0 : i32
    %c0_i32_1 = arith.constant 0 : i32
    return %c0_i32, %c0_i32_0 : i32, i32
  }
  func.func @transform_2(%arg0: i32) -> (i32, i32) {
    %c0_i32 = arith.constant 0 : i32
    %c0_i32_0 = arith.constant 0 : i32
    %c0_i32_1 = arith.constant 0 : i32
    return %c0_i32, %c0_i32_0 : i32, i32
  }
  func.func @transform_3(%arg0: i32) -> (i32, i32) {
    %c0_i32 = arith.constant 0 : i32
    %c0_i32_0 = arith.constant 0 : i32
    %c0_i32_1 = arith.constant 0 : i32
    return %c0_i32, %c0_i32_0 : i32, i32
  }
  func.func @transform_4(%arg0: i32) -> (i32, i32) {
    %c0_i32 = arith.constant 0 : i32
    %c0_i32_0 = arith.constant 0 : i32
    %c0_i32_1 = arith.constant 0 : i32
    return %c0_i32, %c0_i32_0 : i32, i32
  }
  func.func @transform_5(%arg0: i32) -> (i32, i32) {
    %c0_i32 = arith.constant 0 : i32
    %c0_i32_0 = arith.constant 0 : i32
    %c0_i32_1 = arith.constant 0 : i32
    return %c0_i32, %c0_i32_0 : i32, i32
  }
  func.func @transform_6(%arg0: i32) -> (i32, i32) {
    %c0_i32 = arith.constant 0 : i32
    %c0_i32_0 = arith.constant 0 : i32
    %c0_i32_1 = arith.constant 0 : i32
    return %c0_i32, %c0_i32_0 : i32, i32
  }
  func.func @transform_7(%arg0: i32) -> (i32, i32) {
    %c0_i32 = arith.constant 0 : i32
    %c0_i32_0 = arith.constant 0 : i32
    %c0_i32_1 = arith.constant 0 : i32
    return %c0_i32, %c0_i32_0 : i32, i32
  }
  func.func @transform_8(%arg0: i32) -> (i32, i32) {
    %c0_i32 = arith.constant 0 : i32
    %c0_i32_0 = arith.constant 0 : i32
    return %c0_i32, %arg0 : i32, i32
  }
}

</mosaic_0001>

<bundles_post_ra>
// kernel: tpu_custom_call.1
= control target key start
LH: loop header
LB: loop body
LE: loop exit
PB: predicated region body
PF: predicated region fallthrough
CT: control target
= control target key end

     0   :  { %s3196_s0 = inlined_call_operand.hbm [shape: bf16[16,1024], index: 0, kind: input, shape index: {}]   ;;  %s3197_s1 = inlined_call_operand.hbm [shape: bf16[16,16], index: 1, kind: input, shape index: {}]   ;;  %s3198_s2 = inlined_call_operand.hbm [shape: f32[1,512], index: 2, kind: input, shape index: {}]   ;;  %s3199_s3 = inlined_call_operand.hbm [shape: f32[16,512], index: 3, kind: input, shape index: {}]   ;;  %s3200_s4 = inlined_call_operand.hbm [shape: bf16[128,512], index: 4, kind: input, shape index: {}]   ;;  %s3201_s5 = inlined_call_operand.vmem [shape: f32[1,512], index: 5, kind: input, shape index: {}]   ;;  %s3202_s6 = inlined_call_operand.hbm [shape: bf16[512,128], index: 6, kind: input, shape index: {}]   ;;  %s3203_s7 = inlined_call_operand.vmem [shape: f32[1,128], index: 7, kind: input, shape index: {}]   ;;  %s3204_s8 = inlined_call_operand.hbm [shape: f32[16,1024], index: 8, kind: output, shape index: {}]  }
   0x1   :  { %3213 = sst [smem:[#allocation20_spill]] %s3197_s1 }
   0x2   :  { %3214 = sst [smem:[#allocation21_spill]] %s3198_s2 }
   0x3   :  { %13 = vsyncpa [#allocation3], 0 }
   0x4   :  { %15 = vsyncpa [#allocation3 + $0x1], 0 }
   0x5   :  { %16 = vsyncpa [#allocation6], 0 }
   0x6   :  { %17 = vsyncpa [#allocation9], 0 }
   0x7   :  { %18 = vsyncpa [#allocation12], 0 }
   0x8   :  { %19 = vsyncpa [#allocation4], 0 }
   0x9   :  { %21 = vsyncpa [#allocation4 + $0x1], 0  ;;  %s2677_s27 = smov 0   ;;  %s2679_s28 = smov 0  }
   0xa   :  { %s2681_s29 = smov 0   ;;  %s2683_s30 = smov 0  }
   0xb LB: > { %s2698_s9 = sadd.s32 4294967295, %s2610_s30   ;;  %s1937_s10 = sadd.s32 4294967294, %s2610_s30   ;;  %s2610_s30 = sphi %s2683_s30, %s3244_s30   ;;  %s2606_s29 = sphi %s2681_s29, %s3243_s29   ;;  %s2602_s28 = sphi %s2679_s28, %s3242_s28   ;;  %s2598_s27 = sphi %s2677_s27, %s3241_s27  }
   0xc   : > { %p47_p0 = scmp.ne.s32.totalorder %s2602_s28, %s2598_s27  ;;  %p3205_p1 = scmp.eq.s32.totalorder %s2698_s9, 0 }
   0xd   : > { %p224_p3 = scmp.eq.s32.totalorder %s1937_s10, 1  ;;  %p1938_p5 = scmp.ge.s32.totalorder %s2610_s30, 1 }
   0xe   : > { %p2707_p4 = por %p3205_p1, %p47_p0  ;;  %p231_p7 = scmp.lt.s32.totalorder %s2610_s30, 3 }
   0xf   : > { %p2712_p6 = por %p224_p3, %p47_p0  ;;  %s2612_s14 = smov [#allocation5]  }
  0x10   : > { %s3215_s11 = scalar_select %p2707_p4, 1, 0 }
  0x11   : > { %s3216_s12 = scalar_select %p2712_p6, 1, 0 }
  0x12   : > { %p2717_p8 = pnand %p1938_p5, %p231_p7  ;;  %s243_s15 = sshll.u32 %s2612_s14, 4  ;;  %s244_s15 = int_to_ptr.vmem [resolvable:$true] %s243_s15 }
  0x13   : > { %s2613_s17 = smov [#allocation8]   ;;  %s2387_s20 = scalar_lea.vmem %s244_s15, 128 }
  0x14   : > { %s3217_s13 = scalar_select %p2717_p8, 1, 0 }
  0x15   : > { %p2139_p9 = pneg %p2717_p8  ;;  %s267_s18 = sshll.u32 %s2613_s17, 4  ;;  %s268_s18 = int_to_ptr.vmem [resolvable:$true] %s267_s18 }
  0x16   : > { %p2388_p13 = scmp.ne.s32.totalorder %s244_s15, %s2387_s20  ;;  %p2395_p5 = scmp.lt.s32.totalorder %s244_s15, %s244_s15 }
  0x17   : > { %p2726_p11 = pnand %p2139_p9, %p3205_p1  ;;  %p2396_p7 = scmp.lt.s32.totalorder %s2387_s20, %s2387_s20 }
  0x19   : > { %p2732_p12 = pneg %p2726_p11  ;;  %p2397_p9 = por %p2396_p7, %p2395_p5 }
  0x1b   : > { %p2390_p0 = pnand %p2388_p13, %p2732_p12 }
  0x1d   : > { %p2391_p3 = pneg %p2390_p0 }
  0x1f   : > { %p2398_p10 = pnand %p2397_p9, %p2391_p3 }
  0x21   : > { %2401 = shalt.err (!%p2398_p10)
}
  0x22   : > { %s2614_s21 = smov 64   ;;  %s2615_s22 = smov 4  }
  0x23   : > { %s3220_s1 = sld [smem:[#allocation20_spill]]  ;;  %s2413_s25 = scalar_lea.vmem %s268_s18, 1024 }
  0x24   : > { %p2414_p13 = scmp.ne.s32.totalorder %s268_s18, %s2413_s25  ;;  %p2421_p5 = scmp.lt.s32.totalorder %s268_s18, %s268_s18 }
  0x25   : > { %p2422_p3 = scmp.lt.s32.totalorder %s2413_s25, %s2413_s25 }
  0x26   : > { %p2416_p0 = pnand %p2414_p13, %p2732_p12 }
  0x27   : > { %p2423_p10 = por %p2422_p3, %p2421_p5 }
  0x28   : > { %p2417_p1 = pneg %p2416_p0 }
  0x29   : > { %2142 = dma.hbm_to_vmem [thread:$0]  (!%p2726_p11), %s3220_s1, 128, %s244_s15, [#allocation6], %s2614_s21, %s2614_s21, %s2615_s22  }
  0x2a   : > { %p2424_p7 = pnand %p2423_p10, %p2417_p1 }
  0x2c   : > { %2427 = shalt.err (!%p2424_p7)
}
  0x2d   : > { %s3208_s26 = smov 512   ;;  %s2617_s10 = smov 32  }
  0x2e   : > { %2148 = dma.hbm_to_vmem [thread:$0]  (!%p2726_p11), %s3199_s3, 1024, %s268_s18, [#allocation9], %s3208_s26, %s3208_s26, %s2617_s10  }
  0x2f   : > { %s2618_s15 = smov [#allocation7]   ;;  %s2619_s23 = smov [#allocation10]  }
  0x30   : > { %s257_s20 = sshll.u32 %s2618_s15, 4  ;;  %s280_s24 = sshll.u32 %s2619_s23, 4  ;;  %s258_s20 = int_to_ptr.vmem [resolvable:$true] %s257_s20  ;;  %s281_s24 = int_to_ptr.vmem [resolvable:$true] %s280_s24 }
  0x31   : > { %s2439_s25 = scalar_lea.vmem %s258_s20, 64  ;;  %p2447_p0 = scmp.lt.s32.totalorder %s258_s20, %s258_s20 }
  0x32   : > { %p2440_p1 = scmp.ne.s32.totalorder %s258_s20, %s2439_s25  ;;  %p2448_p5 = scmp.lt.s32.totalorder %s2439_s25, %s2439_s25 }
  0x34   : > { %p2442_p9 = pnand %p2440_p1, %p2732_p12  ;;  %p2449_p3 = por %p2448_p5, %p2447_p0 }
  0x36   : > { %p2443_p13 = pneg %p2442_p9 }
  0x38   : > { %p2450_p10 = pnand %p2449_p3, %p2443_p13 }
  0x3a   : > { %2453 = shalt.err (!%p2450_p10)
}
  0x3b   : > { %s3221_s2 = sld [smem:[#allocation21_spill]]  ;;  %s2465_s10 = scalar_lea.vmem %s281_s24, 4096 }
  0x3c   : > { %p2466_p7 = scmp.ne.s32.totalorder %s281_s24, %s2465_s10  ;;  %p2473_p4 = scmp.lt.s32.totalorder %s281_s24, %s281_s24 }
  0x3d   : > { %p2474_p1 = scmp.lt.s32.totalorder %s2465_s10, %s2465_s10 }
  0x3e   : > { %p2468_p2 = pnand %p2466_p7, %p2732_p12 }
  0x3f   : > { %p2475_p9 = por %p2474_p1, %p2473_p4 }
  0x40   : > { %p2469_p6 = pneg %p2468_p2 }
  0x41   : > { %2145 = dma.hbm_to_vmem [thread:$0]  (!%p2726_p11), %s3221_s2, 64, %s258_s20, [#allocation6]  }
  0x42   : > { %p2476_p8 = pnand %p2475_p9, %p2469_p6 }
  0x44   : > { %2479 = shalt.err (!%p2476_p8)
}
  0x45   : > { %s3209_s17 = smov 256   ;;  %s3210_s15 = smov 16  }
  0x46   : > { %2151 = dma.hbm_to_vmem [thread:$0]  (!%p2726_p11), %s3200_s4, 4096, %s281_s24, [#allocation9], %s3209_s17, %s3209_s17, %s3210_s15  }
  0x47   : > { %s2622_s25 = smov [#allocation11]   ;;  %s2773_s18 = sadd.s32 1, %s2610_s30  }
  0x48   : > { %s296_s14 = sshll.u32 %s2622_s25, 4  ;;  %s297_s14 = int_to_ptr.vmem [resolvable:$true] %s296_s14 }
  0x49   : > { %s2491_s10 = scalar_lea.vmem %s297_s14, 4096  ;;  %p2499_p8 = scmp.lt.s32.totalorder %s297_s14, %s297_s14 }
  0x4a   : > { %p2492_p2 = scmp.ne.s32.totalorder %s297_s14, %s2491_s10  ;;  %p2500_p13 = scmp.lt.s32.totalorder %s2491_s10, %s2491_s10 }
  0x4c   : > { %p2494_p4 = pnand %p2492_p2, %p2732_p12  ;;  %p2501_p0 = por %p2500_p13, %p2499_p8 }
  0x4e   : > { %p2495_p6 = pneg %p2494_p4 }
  0x50   : > { %p2502_p5 = pnand %p2501_p0, %p2495_p6 }
  0x52   : > { %2505 = shalt.err (!%p2502_p5)
}
  0x53   : > { %2154 = dma.hbm_to_vmem [thread:$0]  (!%p2726_p11), %s3202_s6, 4096, %s297_s14, [#allocation12], %s2614_s21, %s2614_s21, %s2615_s22  }
  0x54   : > { %s31_s19 = ssub.s32 %s2610_s30, %s2773_s18  ;;  %s34_s16 = sadd.s32 1, %s2606_s29 }
  0x55   : > { %p32_p12 = scmp.eq.s32.totalorder %s31_s19, 0  ;;  %p41_p3 = scmp.ne.s32.totalorder %s2606_s29, %s2602_s28 }
  0x56   : > { %p42_p10 = scmp.eq.s32.totalorder %s2610_s30, 0  ;;  %p2168_p7 = scmp.lt.s32.totalorder %s2610_s30, 2 }
  0x57   : > { %s2793_s23 = scalar_select %p32_p12, %s2606_s29, %s34_s16  }
  0x58   : > { %p43_p1 = por %p42_p10, %p41_p3  ;;  %p3222_p9 = scmp.eq.s32.totalorder %s2698_s9, 1 }
  0x59   : > { %s313_s10 = sand.u32 1, %s2606_s29   ;;  %s2033_s24 = sshll.u32 %s2610_s30, 8 }
  0x5a   : > { %p2797_p2 = por %p3222_p9, %p41_p3  ;;  %s1945_s20 = sshll.u32 %s313_s10, 5 }
  0x5b   : > { %s2806_s21 = scalar_lea.hbm %s3196_s0, %s2033_s24  ;;  %s317_s22 = scalar_lea.vmem [#allocation2], %s1945_s20 }
  0x5c   : > { %s3223_s25 = scalar_select %p2797_p2, 1, 0 }
  0x5d   : > { %s324_s14 = sshll.u32 %s317_s22, 4  ;;  %p2808_p11 = pnand %p2168_p7, %p43_p1  ;;  %s2812_s14 = int_to_ptr.vmem [resolvable:$true] %s324_s14 }
  0x5e   : > { %s2814_s16 = scalar_lea.sflag [#allocation3], %s313_s10  ;;  %s2506_s15 = scalar_lea.hbm %s2806_s21, 512 }
  0x5f   : > { %p2507_p4 = scmp.ne.s32.totalorder %s2806_s21, %s2506_s15  ;;  %p2508_p6 = pneg %p2808_p11 }
  0x60   : > { %s2511_s24 = scalar_lea.hbm %s3196_s0, 1024  ;;  %p2512_p0 = scmp.lt.s32.totalorder %s2806_s21, %s3196_s0 }
  0x61   : > { %p2509_p8 = pnand %p2508_p6, %p2507_p4  ;;  %p2513_p5 = scmp.lt.s32.totalorder %s2511_s24, %s2506_s15 }
  0x63   : > { %p2510_p13 = pneg %p2509_p8  ;;  %p2514_p12 = por %p2513_p5, %p2512_p0 }
  0x65   : > { %p2515_p3 = pnand %p2514_p12, %p2510_p13 }
  0x67   : > { %2518 = shalt.err (!%p2515_p3)
}
  0x68   : > { %s2519_s10 = scalar_lea.vmem %s2812_s14, 512  ;;  %s2623_s1 = smov [#allocation2]  }
  0x69   : > { %p2520_p10 = scmp.ne.s32.totalorder %s2812_s14, %s2519_s10  ;;  %s2524_s2 = sshll.u32 %s2623_s1, 4  ;;  %s2525_s2 = int_to_ptr.vmem [resolvable:$false] %s2524_s2 }
  0x6a   : > { %s2526_s26 = scalar_lea.vmem %s2525_s2, 1024  ;;  %p2527_p9 = scmp.lt.s32.totalorder %s2812_s14, %s2525_s2 }
  0x6b   : > { %p2522_p7 = pnand %p2520_p10, %p2508_p6  ;;  %p2528_p4 = scmp.lt.s32.totalorder %s2526_s26, %s2519_s10 }
  0x6d   : > { %p2523_p1 = pneg %p2522_p7  ;;  %p2529_p8 = por %p2528_p4, %p2527_p9 }
  0x6f   : > { %p2530_p2 = pnand %p2529_p8, %p2523_p1 }
  0x71   : > { %2533 = shalt.err (!%p2530_p2)
}
  0x72   : > { %s3225_s15 = smov 16   ;;  %s3226_s17 = smov 256  }
  0x73   : > { %s3227_s24 = smov 512   ;;  %p3228_p6 = scmp.ne.s32.totalorder %s3217_s13, 0 }
  0x74   : > { %2158 = dma.hbm_to_vmem [thread:$0]  (!%p2808_p11), %s2806_s21, 512, %s2812_s14, %s2814_s16, %s3227_s24, %s3226_s17, %s3225_s15  }
  0x75   : > { %336 = sbr.rel (%p3228_p6) target bundleno = 839 (0x347), region = 52 }
  0x7a   : > { %s2841_s1 = sand.u32 1, %s2602_s28   ;;  %p3229_p2 = scmp.ne.s32.totalorder %s3215_s11, 0 }
  0x7b   : > { %s1949_s2 = sshll.u32 %s2841_s1, 5  ;;  %s339_s20 = scalar_lea.sflag [#allocation3], %s2841_s1 }
  0x7c   : > { %s342_s22 = scalar_lea.vmem [#allocation2], %s1949_s2 }
  0x7d   : > { %2577 = dma.done.wait (%p3229_p2), %s339_s20, 512  }
  0x7e   : > { %2579 = vsyncadd (%p3229_p2), %s339_s20, 4294966784  ;;  %p3230_p13 = scmp.eq.s32.totalorder %s2698_s9, 0 }
  0x80   : > { %2581 = dma.done.wait (%p3230_p13), [#allocation6], 192   ;;  %p3231_p11 = pmov %p3230_p13 }
  0x82   : > { %2583 = vsyncadd (%p3231_p11), [#allocation6], 4294967104  ;;  %p3232_p0 = pmov %p3231_p11 }
  0x84   : > { %2585 = dma.done.wait (%p3232_p0), [#allocation9], 5120   ;;  %p3233_p5 = pmov %p3232_p0 }
  0x85   : > { %p3234_p12 = pmov %p3232_p0 }
  0x86   : > { %2587 = vsyncadd (%p3233_p5), [#allocation9], 4294962176 }
  0x87   : > { %2589 = dma.done.wait (%p3234_p12), [#allocation12], 4096   ;;  %p3235_p3 = pmov %p3232_p0 }
  0x88   : > { %v2624_v0 = vmov 0   ;;  %v2225_v1 = vld [vmem:[%s342_s22 + $0x4] ss:$16 sps:$4 sm:$0xff]   ;;  %v2227_v2 = vld [vmem:[%s342_s22 + $0xc] ss:$16 sps:$4 sm:$0xff]   ;;  %vm429_vm0 = vcmask 130048   ;;  %v521_v39 = vlaneseq }
  0x89   : > { %2591 = vsyncadd (%p3235_p3), [#allocation12], 4294963200  ;;  %465 = vmatprep.mubr.bf16.mxu0 %v2624_v0  ;;  %508 = vmatprep.mubr.bf16.mxu1 %v2624_v0  ;;  %v2229_v3 = vld [vmem:[%s342_s22] ss:$16 sps:$4 sm:$0xff]   ;;  %v2230_v4 = vld [vmem:[%s342_s22 + $0x8] ss:$16 sps:$4 sm:$0xff]  }
  0x8a   : > { %447 = vmatprep.subr.bf16.mxu0 %v2225_v1  ;;  %490 = vmatprep.subr.bf16.mxu1 %v2227_v2  ;;  %v2231_v5 = vld [vmem:[#allocation5] sm:$0xff]   ;;  %v2232_v6 = vld [vmem:[#allocation10 + $0xe0] ss:$16 sps:$4 sm:$0xff]   ;;  %v2237_v9 = vld [vmem:[#allocation10 + $0xec] ss:$16 sps:$4 sm:$0xff]   ;;  %v2865_v40 = vshrl.u32 %v521_v39, 7 }
  0x8b   : > { %448 = vmatpush1.bf16.msra.mxu0 %v2229_v3  ;;  %491 = vmatpush1.bf16.msra.mxu1 %v2230_v4  ;;  %v2234_v7 = vld [vmem:[#allocation10 + $0xe4] ss:$16 sps:$4 sm:$0xff]   ;;  %v2235_v8 = vld [vmem:[#allocation10 + $0xe8] ss:$16 sps:$4 sm:$0xff]   ;;  %v2238_v11 = vld [vmem:[#allocation10 + $0xc0] ss:$16 sps:$4 sm:$0xff]  }
  0x8c   : > { %927 = vmatprep.subr.bf16.mxu0 %v2234_v7  ;;  %v2240_v10 = vld [vmem:[#allocation10 + $0xc4] ss:$16 sps:$4 sm:$0xff]   ;;  %1000 = vmatprep.subr.bf16.mxu1 %v2237_v9  ;;  %v2243_v12 = vld [vmem:[#allocation10 + $0xcc] ss:$16 sps:$4 sm:$0xff]   ;;  %v2241_v13 = vld [vmem:[#allocation10 + $0xc8] ss:$16 sps:$4 sm:$0xff]  }
  0x8d   : > { %v2246_v14 = vld [vmem:[#allocation10 + $0xa4] ss:$16 sps:$4 sm:$0xff]   ;;  %v2249_v15 = vld [vmem:[#allocation10 + $0xac] ss:$16 sps:$4 sm:$0xff]   ;;  %v2244_v16 = vld [vmem:[#allocation10 + $0xa0] ss:$16 sps:$4 sm:$0xff]  }
  0x8e   : > { %1961 = vmatmul.mubr.msk.bf16.vlgmr.msra.gmra.mxu0 %vm429_vm0, %v2231_v5  ;;  %1962 = vmatmul.mubr.msk.bf16.vlgmr.msra.gmra.mxu1 %vm429_vm0, %v2231_v5  ;;  %v2247_v17 = vld [vmem:[#allocation10 + $0xa8] ss:$16 sps:$4 sm:$0xff]   ;;  %v2252_v18 = vld [vmem:[#allocation10 + $0x84] ss:$16 sps:$4 sm:$0xff]   ;;  %v2250_v19 = vld [vmem:[#allocation10 + $0x80] ss:$16 sps:$4 sm:$0xff]  }
  0x8f   : > { %928 = vmatpush1.bf16.msra.mxu0 %v2232_v6  ;;  %1001 = vmatpush1.bf16.msra.mxu1 %v2235_v8  ;;  %v2255_v20 = vld [vmem:[#allocation10 + $0x8c] ss:$16 sps:$4 sm:$0xff]   ;;  %v2253_v21 = vld [vmem:[#allocation10 + $0x88] ss:$16 sps:$4 sm:$0xff]   ;;  %v2258_v22 = vld [vmem:[#allocation10 + $0x64] ss:$16 sps:$4 sm:$0xff]  }
  0x90   : > { %929 = vmatprep.subr.bf16.mxu0 %v2240_v10  ;;  %1002 = vmatprep.subr.bf16.mxu1 %v2243_v12  ;;  %v2261_v23 = vld [vmem:[#allocation10 + $0x6c] ss:$16 sps:$4 sm:$0xff]   ;;  %v2256_v24 = vld [vmem:[#allocation10 + $0x60] ss:$16 sps:$4 sm:$0xff]   ;;  %v2259_v25 = vld [vmem:[#allocation10 + $0x68] ss:$16 sps:$4 sm:$0xff]  }
  0x91   : > { %959 = vmatprep.mubr.bf16.mxu0 %v2624_v0  ;;  %1032 = vmatprep.mubr.bf16.mxu1 %v2624_v0  ;;  %v2264_v26 = vld [vmem:[#allocation10 + $0x44] ss:$16 sps:$4 sm:$0xff]   ;;  %v2267_v27 = vld [vmem:[#allocation10 + $0x4c] ss:$16 sps:$4 sm:$0xff]   ;;  %v2262_v28 = vld [vmem:[#allocation10 + $0x40] ss:$16 sps:$4 sm:$0xff]  }
  0x92   : > { %v2265_v29 = vld [vmem:[#allocation10 + $0x48] ss:$16 sps:$4 sm:$0xff]   ;;  %v2270_v30 = vld [vmem:[#allocation10 + $0x24] ss:$16 sps:$4 sm:$0xff]   ;;  %v2273_v31 = vld [vmem:[#allocation10 + $0x2c] ss:$16 sps:$4 sm:$0xff]  }
  0x93   : > { %930 = vmatpush1.bf16.msra.mxu0 %v2238_v11  ;;  %1003 = vmatpush1.bf16.msra.mxu1 %v2241_v13  ;;  %v2268_v32 = vld [vmem:[#allocation10 + $0x20] ss:$16 sps:$4 sm:$0xff]   ;;  %v2271_v33 = vld [vmem:[#allocation10 + $0x28] ss:$16 sps:$4 sm:$0xff]   ;;  %v2276_v34 = vld [vmem:[#allocation10 + $0x4] ss:$16 sps:$4 sm:$0xff]  }
  0x94   : > { %931 = vmatprep.subr.bf16.mxu0 %v2246_v14  ;;  %1004 = vmatprep.subr.bf16.mxu1 %v2249_v15  ;;  %v2279_v35 = vld [vmem:[#allocation10 + $0xc] ss:$16 sps:$4 sm:$0xff]   ;;  %v2274_v36 = vld [vmem:[#allocation10] ss:$16 sps:$4 sm:$0xff]   ;;  %v2277_v37 = vld [vmem:[#allocation10 + $0x8] ss:$16 sps:$4 sm:$0xff]  }
  0x95   : > { %v2280_v38 = vld [vmem:[#allocation11 + $0x78] sm:$0xff]   ;;  %v523_v41 = vsub.s32 0, %v2865_v40  ;;  %v531_v42 = vsub.s32 2, %v2865_v40  ;;  %v527_v44 = vsub.s32 1, %v2865_v40  ;;  %v535_v45 = vsub.s32 3, %v2865_v40  ;;  %v549_v58 = vld [vmem:[#allocation8] sm:$0xff] }
  0x96   : > { %v519_v43 = vld [vmem:[#allocation7] sm:$0xf]  ;;  %v2625_v46 = vmov 1983009808   ;;  %v2626_v55 = vmov 1966171168  }
  0x97   : > { %932 = vmatpush1.bf16.msra.mxu0 %v2244_v16  ;;  %1005 = vmatpush1.bf16.msra.mxu1 %v2247_v17  ;;  %v578_v47 = vunpack.c.l.s4 %v2625_v46  ;;  %v524_v48 = vrot.slane %v519_v43, %v523_v41  ;;  %v532_v49 = vrot.slane %v519_v43, %v531_v42  ;;  %v528_v50 = vrot.slane %v519_v43, %v527_v44  ;;  %v551_v60 = vld [vmem:[#allocation8 + $0x10] sm:$0xff]  ;;  %v550_v62 = vld [vmem:[#allocation8 + $0x8] sm:$0xff]  ;;  %v552_v1 = vld [vmem:[#allocation8 + $0x18] sm:$0xff]  ;;  %s1955_s19 = sshll.u32 %s2841_s1, 6  ;;  %s2034_s10 = sshll.u32 %s2698_s9, 9 }
  0x98   : > { %933 = vmatprep.subr.bf16.mxu0 %v2252_v18  ;;  %1006 = vmatprep.subr.bf16.mxu1 %v2255_v20  ;;  %v536_v51 = vrot.slane %v519_v43, %v535_v45  ;;  %v654_v56 = vunpack.c.l.s4 %v2626_v55  ;;  %s3123_s16 = scalar_lea.vmem [#allocation13], %s1955_s19  ;;  %s3147_s24 = scalar_lea.hbm %s3204_s8, %s2034_s10 }
  0x99   : > { %v579_v53 = vunpack.c.0.s8 %v578_v47  ;;  %s1816_s26 = sshll.u32 %s3123_s16, 4  ;;  %s1803_s9 = scalar_lea.sflag [#allocation4], %s2841_s1  ;;  %s3149_s26 = int_to_ptr.vmem [resolvable:$true] %s1816_s26 }
  0x9a   : > { %v655_v7 = vunpack.c.0.s8 %v654_v56  ;;  %s2534_s2 = scalar_lea.vmem %s3149_s26, 1024  ;;  %p3238_p7 = scmp.ne.s32.totalorder %s3223_s25, 0 }
  0x9b   : > { %934 = vmatpush1.bf16.msra.mxu0 %v2250_v19  ;;  %1007 = vmatpush1.bf16.msra.mxu1 %v2253_v21  ;;  %v2880_v4 = vsub.s32 %v579_v53, %v2865_v40  ;;  %v554_v19 = vld [vmem:[#allocation8 + $0x28] sm:$0xff]  ;;  %v556_v21 = vld [vmem:[#allocation8 + $0x38] sm:$0xff]  ;;  %p2535_p10 = scmp.ne.s32.totalorder %s3149_s26, %s2534_s2  ;;  %s2628_s20 = smov [#allocation13]  }
  0x9c   : > { %935 = vmatprep.subr.bf16.mxu0 %v2258_v22  ;;  %1008 = vmatprep.subr.bf16.mxu1 %v2261_v23  ;;  %v658_v22 = vsub.s32 %v655_v7, %v2865_v40  ;;  %v2281_v7 = vld [vmem:[#allocation11 + $0x38] sm:$0xff]   ;;  %s2538_s22 = sshll.u32 %s2628_s20, 4  ;;  %s2539_s22 = int_to_ptr.vmem [resolvable:$false] %s2538_s22 }
  0x9d   : > { %p2536_p1 = pnand %p2535_p10, %p3238_p7  ;;  %s2540_s11 = scalar_lea.vmem %s2539_s22, 2048 }
  0x9e   : > { %p2541_p4 = scmp.lt.s32.totalorder %s3149_s26, %s2539_s22  ;;  %p2542_p8 = scmp.lt.s32.totalorder %s2540_s11, %s2534_s2 }
  0x9f   : > { %936 = vmatpush1.bf16.msra.mxu0 %v2256_v24  ;;  %1009 = vmatpush1.bf16.msra.mxu1 %v2259_v25  ;;  %p2537_p9 = pneg %p2536_p1 }
  0xa0   : > { %937 = vmatprep.subr.bf16.mxu0 %v2264_v26  ;;  %1010 = vmatprep.subr.bf16.mxu1 %v2267_v27  ;;  %p2543_p6 = por %p2542_p8, %p2541_p4 }
  0xa2   : > { %p2544_p2 = pnand %p2543_p6, %p2537_p9 }
  0xa3   : > { %938 = vmatpush1.bf16.msra.mxu0 %v2262_v28  ;;  %1011 = vmatpush1.bf16.msra.mxu1 %v2265_v29  ;;  %v553_v29 = vld [vmem:[#allocation8 + $0x20] sm:$0xff] }
  0xa4   : > { %939 = vmatprep.subr.bf16.mxu0 %v2270_v30  ;;  %1012 = vmatprep.subr.bf16.mxu1 %v2273_v31  ;;  %v555_v30 = vld [vmem:[#allocation8 + $0x30] sm:$0xff] }
  0xa7   : > { %940 = vmatpush1.bf16.msra.mxu0 %v2268_v32  ;;  %1013 = vmatpush1.bf16.msra.mxu1 %v2271_v33 }
  0xa8   : > { %941 = vmatprep.subr.bf16.mxu0 %v2276_v34  ;;  %1014 = vmatprep.subr.bf16.mxu1 %v2279_v35 }
  0xab   : > { %942 = vmatpush1.bf16.msra.mxu0 %v2274_v36  ;;  %1015 = vmatpush1.bf16.msra.mxu1 %v2277_v37 }
  0xac   : > { %2035 = vmatprep.subr.bf16.mxu0 %v2280_v38 }
 0x14e   : > { %v467_v52 = vpop.f32.mrf.mxu0  ;;  %v510_v54 = vpop.f32.mrf.mxu1 }
 0x14f   : > { %v541_v57 = vmul.f32 %v524_v48, %v467_v52  ;;  %v543_v59 = vmul.f32 %v532_v49, %v510_v54 }
 0x150   : > { %v469_v61 = vpop.f32.mrf.mxu0  ;;  %v512_v63 = vpop.f32.mrf.mxu1 }
 0x151   : > { %v542_v2 = vmul.f32 %v528_v50, %v469_v61  ;;  %v544_v3 = vmul.f32 %v536_v51, %v512_v63  ;;  %v557_v8 = vadd.f32 %v549_v58, %v541_v57  ;;  %v559_v9 = vadd.f32 %v551_v60, %v543_v59 }
 0x152   : > { %v471_v5 = vpop.f32.mrf.mxu0  ;;  %v514_v6 = vpop.f32.mrf.mxu1 }
 0x153   : > { %v558_v10 = vadd.f32 %v550_v62, %v542_v2  ;;  %v560_v11 = vadd.f32 %v552_v1, %v544_v3  ;;  %v545_v25 = vmul.f32 %v524_v48, %v471_v5  ;;  %v547_v26 = vmul.f32 %v532_v49, %v514_v6  ;;  %v2282_v6 = vld [vmem:[#allocation11 + $0xf8] sm:$0xff]  }
 0x154   : > { %v473_v12 = vpop.f32.mrf.mxu0  ;;  %v516_v13 = vpop.f32.mrf.mxu1  ;;  %2075 = vmatprep.subr.bf16.mxu1 %v2282_v6 }
 0x155   : > { %v573_v14 = vcombine.low %v557_v8, %v558_v10  ;;  %v574_v15 = vcombine.high %v557_v8, %v558_v10  ;;  %v575_v16 = vcombine.low %v559_v9, %v560_v11  ;;  %v576_v17 = vcombine.high %v559_v9, %v560_v11  ;;  %v2283_v8 = vld [vmem:[#allocation11 + $0xb8] sm:$0xff]   ;;  %v2284_v9 = vld [vmem:[#allocation11 + $0x70] sm:$0xff]  }
 0x156   : > { %v546_v18 = vmul.f32 %v528_v50, %v473_v12  ;;  %v548_v20 = vmul.f32 %v536_v51, %v516_v13  ;;  %v561_v35 = vadd.f32 %v553_v29, %v545_v25  ;;  %v563_v36 = vadd.f32 %v555_v30, %v547_v26  ;;  %v2286_v10 = vld [vmem:[#allocation11 + $0xf0] sm:$0xff]   ;;  %v2290_v13 = vld [vmem:[#allocation11 + $0xe8] sm:$0xff]  }
 0x157   : > { %v583_v23 = vrot.slane %v573_v14, %v2880_v4  ;;  %v597_v24 = vrot.slane %v575_v16, %v2880_v4  ;;  %v590_v27 = vrot.slane %v574_v15, %v2880_v4  ;;  %v604_v28 = vrot.slane %v576_v17, %v2880_v4  ;;  %v2285_v11 = vld [vmem:[#allocation11 + $0x30] sm:$0xff]   ;;  %v2289_v14 = vld [vmem:[#allocation11 + $0x28] sm:$0xff]   ;;  %v2292_v16 = vld [vmem:[#allocation11 + $0x60] sm:$0xff]  }
 0x158   : > { %v562_v33 = vadd.f32 %v554_v19, %v546_v18  ;;  %v564_v34 = vadd.f32 %v556_v21, %v548_v20  ;;  %v2287_v12 = vld [vmem:[#allocation11 + $0xb0] sm:$0xff]   ;;  %v2291_v15 = vld [vmem:[#allocation11 + $0xa8] sm:$0xff]   ;;  %v2294_v17 = vld [vmem:[#allocation11 + $0xe0] sm:$0xff]  }
 0x159   : > { %v605_v31 = vcombine.low %v583_v23, %v597_v24  ;;  %v606_v32 = vcombine.high %v583_v23, %v597_v24  ;;  %v607_v39 = vcombine.low %v590_v27, %v604_v28  ;;  %v608_v48 = vcombine.high %v590_v27, %v604_v28  ;;  %v2293_v18 = vld [vmem:[#allocation11 + $0x20] sm:$0xff]   ;;  %v2296_v20 = vld [vmem:[#allocation11 + $0x58] sm:$0xff]   ;;  %v2300_v24 = vld [vmem:[#allocation11 + $0x50] sm:$0xff]  }
 0x15a   : > { %v609_v43 = vcombine.low %v561_v35, %v562_v33  ;;  %v611_v46 = vcombine.low %v563_v36, %v564_v34  ;;  %v610_v53 = vcombine.high %v561_v35, %v562_v33  ;;  %v612_v54 = vcombine.high %v563_v36, %v564_v34  ;;  %v2295_v19 = vld [vmem:[#allocation11 + $0xa0] sm:$0xff]   ;;  %v2298_v21 = vld [vmem:[#allocation11 + $0xd8] sm:$0xff]   ;;  %v2302_v25 = vld [vmem:[#allocation11 + $0xd0] sm:$0xff]  }
 0x15b   : > { %v2887_v37 = vrot.slane %v605_v31, %v658_v22  ;;  %v2889_v38 = vrot.slane %v606_v32, %v658_v22  ;;  %v2897_v51 = vrot.slane %v607_v39, %v658_v22  ;;  %v2899_v52 = vrot.slane %v608_v48, %v658_v22  ;;  %v2299_v23 = vld [vmem:[#allocation11 + $0x98] sm:$0xff]   ;;  %v2301_v26 = vld [vmem:[#allocation11 + $0x10] sm:$0xff]   ;;  %v2304_v28 = vld [vmem:[#allocation11 + $0x48] sm:$0xff]  }
 0x15c   : > { %v619_v49 = vrot.slane %v609_v43, %v2880_v4  ;;  %v633_v50 = vrot.slane %v611_v46, %v2880_v4  ;;  %v626_v58 = vrot.slane %v610_v53, %v2880_v4  ;;  %v640_v59 = vrot.slane %v612_v54, %v2880_v4  ;;  %v2303_v27 = vld [vmem:[#allocation11 + $0x90] sm:$0xff]   ;;  %v2306_v29 = vld [vmem:[#allocation11 + $0xc8] sm:$0xff]   ;;  %v2308_v32 = vld [vmem:[#allocation11 + $0x40] sm:$0xff]  }
 0x15d   : > { %v709_v47 = vpack.c.bf16 %v2889_v38, %v2887_v37  ;;  %v710_v55 = vpack.c.bf16 %v2899_v52, %v2897_v51  ;;  %v2305_v30 = vld [vmem:[#allocation11 + $0x8] sm:$0xff]   ;;  %v2310_v33 = vld [vmem:[#allocation11 + $0xc0] sm:$0xff]   ;;  %v745_v36 = vld [vmem:[%s3201_s5] sm:$0xf] }
 0x15e   : > { %v641_v56 = vcombine.low %v619_v49, %v633_v50  ;;  %v642_v57 = vcombine.high %v619_v49, %v633_v50  ;;  %v643_v63 = vcombine.low %v626_v58, %v640_v59  ;;  %v644_v1 = vcombine.high %v626_v58, %v640_v59  ;;  %v2307_v31 = vld [vmem:[#allocation11 + $0x88] sm:$0xff]   ;;  %v2309_v34 = vld [vmem:[#allocation11] sm:$0xff]  }
 0x15f   : > { %960 = vmatmul.mubr.bf16.vlgmr.msra.gmra.mxu0 %v709_v47  ;;  %1033 = vmatmul.mubr.bf16.vlgmr.msra.gmra.mxu1 %v709_v47  ;;  %v2311_v35 = vld [vmem:[#allocation11 + $0x80] sm:$0xff]   ;;  %v2926_v39 = vrot.slane %v745_v36, %v523_v41  ;;  %v2930_v47 = vrot.slane %v745_v36, %v531_v42  ;;  %v2934_v48 = vrot.slane %v745_v36, %v527_v44 }
 0x160   : > { %969 = vmatprep.mubr.bf16.mxu0 %v2624_v0  ;;  %1042 = vmatprep.mubr.bf16.mxu1 %v2624_v0  ;;  %v2907_v60 = vrot.slane %v641_v56, %v658_v22  ;;  %v2909_v61 = vrot.slane %v642_v57, %v658_v22  ;;  %v2915_v2 = vrot.slane %v643_v63, %v658_v22 }
 0x161   : > { %v2917_v3 = vrot.slane %v644_v1, %v658_v22  ;;  %2036 = vmatpush3.bf16.msra.mxu0 %v2281_v7  ;;  %2076 = vmatpush3.bf16.msra.mxu1 %v2283_v8  ;;  %v2297_v22 = vld [vmem:[#allocation11 + $0x18] sm:$0xff]   ;;  %v2938_v53 = vrot.slane %v745_v36, %v535_v45 }
 0x162   : > { %v711_v62 = vpack.c.bf16 %v2909_v61, %v2907_v60  ;;  %2037 = vmatprep.subr.bf16.mxu0 %v2284_v9  ;;  %2077 = vmatprep.subr.bf16.mxu1 %v2286_v10 }
 0x163   : > { %3236 = vst [vmem:[#allocation19_spill] sm:$0xff] %v2917_v3  ;;  %v712_v5 = vpack.c.bf16 %v2917_v3, %v2915_v2 }
 0x165   : > { %2038 = vmatpush3.bf16.msra.mxu0 %v2285_v11  ;;  %2078 = vmatpush3.bf16.msra.mxu1 %v2287_v12 }
 0x166   : > { %2079 = vmatprep.subr.bf16.mxu1 %v2290_v13 }
 0x167   : > { %970 = vmatmul.mubr.bf16.gmra.mxu0 %v710_v55  ;;  %1043 = vmatmul.mubr.bf16.gmra.mxu1 %v710_v55 }
 0x168   : > { %979 = vmatprep.mubr.bf16.mxu0 %v2624_v0  ;;  %1052 = vmatprep.mubr.bf16.mxu1 %v2624_v0 }
 0x169   : > { %2080 = vmatpush3.bf16.msra.mxu1 %v2291_v15 }
 0x16a   : > { %2081 = vmatprep.subr.bf16.mxu1 %v2294_v17 }
 0x16d   : > { %2082 = vmatpush3.bf16.msra.mxu1 %v2295_v19 }
 0x16e   : > { %2083 = vmatprep.subr.bf16.mxu1 %v2298_v21 }
 0x16f   : > { %980 = vmatmul.mubr.bf16.gmra.mxu0 %v711_v62  ;;  %1053 = vmatmul.mubr.bf16.gmra.mxu1 %v711_v62 }
 0x170   : > { %989 = vmatprep.mubr.bf16.mxu0 %v2624_v0  ;;  %1062 = vmatprep.mubr.bf16.mxu1 %v2624_v0  ;;  %v2288_v0 = vld [vmem:[#allocation11 + $0x68] sm:$0xff]  }
 0x171   : > { %2039 = vmatprep.subr.bf16.mxu0 %v2288_v0  ;;  %2084 = vmatpush3.bf16.msra.mxu1 %v2299_v23 }
 0x172   : > { %2040 = vmatpush3.bf16.msra.mxu0 %v2289_v14  ;;  %2085 = vmatprep.subr.bf16.mxu1 %v2302_v25 }
 0x173   : > { %2041 = vmatprep.subr.bf16.mxu0 %v2292_v16 }
 0x175   : > { %2086 = vmatpush3.bf16.msra.mxu1 %v2303_v27 }
 0x176   : > { %2042 = vmatpush3.bf16.msra.mxu0 %v2293_v18  ;;  %2087 = vmatprep.subr.bf16.mxu1 %v2306_v29 }
 0x177   : > { %990 = vmatmul.mubr.bf16.gmra.mxu0 %v712_v5  ;;  %1063 = vmatmul.mubr.bf16.gmra.mxu1 %v712_v5 }
 0x178   : > { %2043 = vmatprep.subr.bf16.mxu0 %v2296_v20 }
 0x179   : > { %2088 = vmatpush3.bf16.msra.mxu1 %v2307_v31 }
 0x17a   : > { %2044 = vmatpush3.bf16.msra.mxu0 %v2297_v22  ;;  %2089 = vmatprep.subr.bf16.mxu1 %v2310_v33 }
 0x17b   : > { %2045 = vmatprep.subr.bf16.mxu0 %v2300_v24 }
 0x17d   : > { %2090 = vmatpush3.bf16.msra.mxu1 %v2311_v35 }
 0x17e   : > { %2046 = vmatpush3.bf16.msra.mxu0 %v2301_v26 }
 0x17f   : > { %2047 = vmatprep.subr.bf16.mxu0 %v2304_v28 }
 0x182   : > { %2048 = vmatpush3.bf16.msra.mxu0 %v2305_v30 }
 0x183   : > { %2049 = vmatprep.subr.bf16.mxu0 %v2308_v32 }
 0x186   : > { %2050 = vmatpush3.bf16.msra.mxu0 %v2309_v34 }
 0x21f   : > { %v961_v43 = vpop.f32.mrf.mxu0  ;;  %v1034_v46 = vpop.f32.mrf.mxu1 }
 0x220   : > { %v962_v54 = vadd.f32 %v961_v43, %v2926_v39  ;;  %v1035_v56 = vadd.f32 %v1034_v46, %v2930_v47 }
 0x221   : > { %v963_v49 = vpop.f32.mrf.mxu0  ;;  %v1036_v50 = vpop.f32.mrf.mxu1 }
 0x222   : > { %v964_v57 = vadd.f32 %v963_v49, %v2934_v48  ;;  %v1105_v44 = vmul.f32 0.70710677, %v962_v54  ;;  %v1037_v62 = vadd.f32 %v1036_v50, %v2938_v53  ;;  %v1107_v5 = vmul.f32 0.70710677, %v1035_v56 }
 0x223   : > { %v965_v41 = vpop.f32.mrf.mxu0  ;;  %v1038_v55 = vpop.f32.mrf.mxu1  ;;  %v2960_v35 = vmul.f32 0.5, %v962_v54  ;;  %v2963_v43 = vmul.f32 0.5, %v1035_v56 }
 0x224   : > { %v966_v59 = vadd.f32 %v965_v41, %v2926_v39  ;;  %v1039_v45 = vadd.f32 %v1038_v55, %v2930_v47  ;;  %v1106_v6 = vmul.f32 0.70710677, %v964_v57  ;;  %2312 = verf.f32 %v1105_v44 }
 0x225   : > { %v967_v42 = vpop.f32.mrf.mxu0  ;;  %v1040_v58 = vpop.f32.mrf.mxu1  ;;  %v1108_v11 = vmul.f32 0.70710677, %v1037_v62  ;;  %2314 = verf.f32 %v1107_v5  ;;  %v2965_v46 = vmul.f32 0.5, %v964_v57  ;;  %v2967_v55 = vmul.f32 0.5, %v1037_v62 }
 0x226   : > { %v1109_v9 = vmul.f32 0.70710677, %v966_v59  ;;  %v968_v10 = vadd.f32 %v967_v42, %v2934_v48  ;;  %v1041_v12 = vadd.f32 %v1040_v58, %v2938_v53  ;;  %v1111_v14 = vmul.f32 0.70710677, %v1039_v45 }
 0x227   : > { %v971_v63 = vpop.f32.mrf.mxu0  ;;  %v1044_v1 = vpop.f32.mrf.mxu1  ;;  %2316 = verf.f32 %v1106_v6  ;;  %v1077_v54 = vmul.f32 0.5, %v966_v59 }
 0x228   : > { %2318 = verf.f32 %v1109_v9  ;;  %v1110_v17 = vmul.f32 0.70710677, %v968_v10  ;;  %v1112_v19 = vmul.f32 0.70710677, %v1041_v12  ;;  %v972_v25 = vadd.f32 %v971_v63, %v2926_v39 }
 0x229   : > { %v973_v7 = vpop.f32.mrf.mxu0  ;;  %v1046_v8 = vpop.f32.mrf.mxu1  ;;  %2320 = verf.f32 %v1108_v11  ;;  %v2956_v28 = vadd.f32 %v1044_v1, %v2930_v47  ;;  %v2976_v63 = vmul.f32 0.5, %v1039_v45  ;;  %v2978_v1 = vmul.f32 0.5, %v968_v10 }
 0x22a   : > { %v974_v18 = vadd.f32 %v973_v7, %v2934_v48  ;;  %v1047_v20 = vadd.f32 %v1046_v8, %v2938_v53  ;;  %2322 = verf.f32 %v1111_v14  ;;  %v1113_v49 = vmul.f32 0.70710677, %v972_v25 }
 0x22b   : > { %v975_v0 = vpop.f32.mrf.mxu0  ;;  %v1048_v13 = vpop.f32.mrf.mxu1  ;;  %2324 = verf.f32 %v1110_v17  ;;  %v1115_v42 = vmul.f32 0.70710677, %v2956_v28  ;;  %v2983_v7 = vmul.f32 0.5, %v1041_v12  ;;  %v2985_v8 = vmul.f32 0.5, %v972_v25 }
 0x22c   : > { %v1114_v29 = vmul.f32 0.70710677, %v974_v18  ;;  %2326 = verf.f32 %v1112_v19  ;;  %v1116_v31 = vmul.f32 0.70710677, %v1047_v20  ;;  %v976_v32 = vadd.f32 %v975_v0, %v2926_v39 }
 0x22d   : > { %v977_v15 = vpop.f32.mrf.mxu0  ;;  %v1050_v16 = vpop.f32.mrf.mxu1  ;;  %v1049_v36 = vadd.f32 %v1048_v13, %v2930_v47  ;;  %v2990_v45 = vmul.f32 0.5, %v974_v18  ;;  %v2992_v10 = vmul.f32 0.5, %v1047_v20 }
 0x22e   : > { %v978_v23 = vadd.f32 %v977_v15, %v2934_v48  ;;  %v2952_v24 = vadd.f32 %v1050_v16, %v2938_v53  ;;  %v1117_v44 = vmul.f32 0.70710677, %v976_v32  ;;  %v2995_v15 = vmul.f32 0.5, %v976_v32 }
 0x22f   : > { %v981_v21 = vpop.f32.mrf.mxu0  ;;  %v1054_v22 = vpop.f32.mrf.mxu1  ;;  %v1119_v5 = vmul.f32 0.70710677, %v1049_v36  ;;  %v2997_v12 = vmul.f32 0.5, %v1049_v36 }
 0x230   : > { %v1118_v30 = vmul.f32 0.70710677, %v978_v23  ;;  %v1120_v33 = vmul.f32 0.70710677, %v2952_v24  ;;  %v2981_v62 = vadd.f32 %v981_v21, %v2926_v39  ;;  %v2988_v59 = vadd.f32 %v1054_v22, %v2930_v47 }
 0x231   : > { %v983_v26 = vpop.f32.mrf.mxu0  ;;  %v1056_v27 = vpop.f32.mrf.mxu1  ;;  %v3004_v22 = vmul.f32 0.5, %v978_v23 }
 0x232   : > { %2328 = verf.f32 %v1118_v30  ;;  %v2971_v58 = vadd.f32 %v983_v26, %v2934_v48  ;;  %v2974_v56 = vadd.f32 %v1056_v27, %v2938_v53  ;;  %v2313_v57 = vpop.eup %2312  ;;  %v1121_v21 = vmul.f32 0.70710677, %v2981_v62 }
 0x233   : > { %v985_v34 = vpop.f32.mrf.mxu0  ;;  %2330 = verf.f32 %v1120_v33  ;;  %v1058_v50 = vpop.f32.mrf.mxu1  ;;  %v1169_v19 = vadd.f32 1.0, %v2313_v57  ;;  %v1123_v25 = vmul.f32 0.70710677, %v2988_v59 }
 0x234   : > { %2332 = verf.f32 %v1114_v29  ;;  %v2315_v6 = vpop.eup %2314  ;;  %v1122_v13 = vmul.f32 0.70710677, %v2971_v58  ;;  %v1124_v16 = vmul.f32 0.70710677, %v2974_v56  ;;  %v3002_v18 = vadd.f32 %v985_v34, %v2926_v39 }
 0x235   : > { %v987_v41 = vpop.f32.mrf.mxu0  ;;  %2334 = verf.f32 %v1116_v31  ;;  %v1060_v9 = vpop.f32.mrf.mxu1  ;;  %v3008_v26 = vadd.f32 %v1058_v50, %v2930_v47  ;;  %v1171_v31 = vadd.f32 1.0, %v2315_v6 }
 0x236   : > { %2336 = verf.f32 %v1113_v49  ;;  %v2317_v0 = vpop.eup %2316  ;;  %v3011_v27 = vadd.f32 %v987_v41, %v2934_v48  ;;  %v3014_v33 = vadd.f32 %v1060_v9, %v2938_v53  ;;  %v1088_v49 = vmul.f32 0.5, %v2952_v24 }
 0x237   : > { %v991_v11 = vpop.f32.mrf.mxu0  ;;  %2338 = verf.f32 %v1115_v42  ;;  %v2319_v14 = vpop.eup %2318  ;;  %v1170_v36 = vadd.f32 1.0, %v2317_v0  ;;  %v1125_v41 = vmul.f32 0.70710677, %v3002_v18  ;;  %v1127_v6 = vmul.f32 0.70710677, %v3008_v26 }
 0x238   : > { %2340 = verf.f32 %v1117_v44  ;;  %v2321_v17 = vpop.eup %2320  ;;  %v1064_v29 = vpop.f32.mrf.mxu1  ;;  %v1173_v32 = vadd.f32 1.0, %v2319_v14  ;;  %v1126_v44 = vmul.f32 0.70710677, %v3011_v27  ;;  %v1128_v9 = vmul.f32 0.70710677, %v3014_v33 }
 0x239   : > { %2342 = verf.f32 %v1119_v5  ;;  %v2323_v20 = vpop.eup %2322  ;;  %v993_v30 = vpop.f32.mrf.mxu0  ;;  %v1172_v23 = vadd.f32 1.0, %v2321_v17  ;;  %v3020_v5 = vmul.f32 %v1169_v19, %v2960_v35  ;;  %v3027_v17 = vadd.f32 %v991_v11, %v2926_v39 }
 0x23a   : > { %2344 = verf.f32 %v1122_v13  ;;  %v2325_v34 = vpop.eup %2324  ;;  %v1175_v50 = vadd.f32 1.0, %v2323_v20  ;;  %v1066_v0 = vpop.f32.mrf.mxu1  ;;  %v3024_v14 = vmul.f32 %v1173_v32, %v1077_v54  ;;  %v3030_v20 = vmul.f32 %v1171_v31, %v2963_v43 }
 0x23b   : > { %2346 = verf.f32 %v1124_v16  ;;  %v2327_v42 = vpop.eup %2326  ;;  %v995_v13 = vpop.f32.mrf.mxu0  ;;  %v1174_v16 = vadd.f32 1.0, %v2325_v34  ;;  %v1202_v35 = vmul.f32 %v1170_v36, %v2965_v46  ;;  %v3034_v19 = vadd.f32 %v993_v30, %v2934_v48 }
 0x23c   : > { %2348 = verf.f32 %v1121_v21  ;;  %v1204_v3 = vmul.f32 %v1172_v23, %v2967_v55  ;;  %v3038_v54 = vmul.f32 %v1175_v50, %v2976_v63  ;;  %v1176_v32 = vadd.f32 1.0, %v2327_v42  ;;  %v1068_v31 = vpop.f32.mrf.mxu1 }
 0x23d   : > { %2350 = verf.f32 %v1123_v25  ;;  %v1129_v43 = vmul.f32 0.70710677, %v3027_v17  ;;  %v1233_v30 = vpack.c.bf16 %v3024_v14, %v3020_v5  ;;  %v1206_v36 = vmul.f32 %v1174_v16, %v2978_v1 }
 0x23e   : > { %2352 = verf.f32 %v1126_v44  ;;  %v997_v44 = vpop.f32.mrf.mxu0  ;;  %v1130_v55 = vmul.f32 0.70710677, %v3034_v19  ;;  %v3046_v42 = vadd.f32 %v1064_v29, %v2930_v47  ;;  %v3049_v50 = vadd.f32 %v1066_v0, %v2938_v53 }
 0x23f   : > { %v2329_v57 = vpop.eup %2328  ;;  %2354 = verf.f32 %v1128_v9  ;;  %v1235_v5 = vpack.c.bf16 %v3038_v54, %v3030_v20  ;;  %v1208_v1 = vmul.f32 %v1176_v32, %v2983_v7 }
 0x240   : > { %v2331_v24 = vpop.eup %2330  ;;  %2356 = verf.f32 %v1125_v41  ;;  %v1182_v11 = vadd.f32 1.0, %v2329_v57  ;;  %v3052_v41 = vadd.f32 %v995_v13, %v2926_v39  ;;  %v1132_v39 = vmul.f32 0.70710677, %v3049_v50  ;;  %v1070_v13 = vpop.f32.mrf.mxu1 }
 0x241   : > { %v2333_v21 = vpop.eup %2332  ;;  %v1184_v34 = vadd.f32 1.0, %v2331_v24  ;;  %2358 = verf.f32 %v1127_v6  ;;  %v3058_v6 = vadd.f32 %v1068_v31, %v2930_v47  ;;  %v3061_v24 = vadd.f32 %v997_v44, %v2934_v48 }
 0x242   : > { %v2335_v25 = vpop.eup %2334  ;;  %v1178_v9 = vadd.f32 1.0, %v2333_v21  ;;  %v1214_v14 = vmul.f32 %v1182_v11, %v3004_v22  ;;  %2360 = verf.f32 %v1129_v43  ;;  %v1133_v21 = vmul.f32 0.70710677, %v3052_v41 }
 0x243   : > { %v2337_v46 = vpop.eup %2336  ;;  %v1180_v23 = vadd.f32 1.0, %v2335_v25  ;;  %v1216_v0 = vmul.f32 %v1184_v34, %v1088_v49  ;;  %2362 = verf.f32 %v1130_v55  ;;  %v1135_v7 = vmul.f32 0.70710677, %v3058_v6 }
 0x244   : > { %v2339_v63 = vpop.eup %2338  ;;  %v1210_v16 = vmul.f32 %v1178_v9, %v2990_v45  ;;  %v1131_v48 = vmul.f32 0.70710677, %v3046_v42  ;;  %2364 = verf.f32 %v1132_v39  ;;  %v1134_v22 = vmul.f32 0.70710677, %v3061_v24 }
 0x245   : > { %v2341_v57 = vpop.eup %2340  ;;  %v1212_v20 = vmul.f32 %v1180_v23, %v2992_v10  ;;  %2366 = verf.f32 %v1133_v21  ;;  %v3072_v54 = vadd.f32 %v1070_v13, %v2938_v53  ;;  %v1234_v45 = vpack.c.bf16 %v1206_v36, %v1202_v35 }
 0x246   : > { %v2343_v29 = vpop.eup %2342  ;;  %v1181_v25 = vadd.f32 1.0, %v2341_v57  ;;  %2368 = verf.f32 %v1135_v7  ;;  %v1236_v11 = vpack.c.bf16 %v1208_v1, %v1204_v3  ;;  %v1238_v34 = vpack.c.bf16 %v1214_v14, %v1210_v16 }
 0x247   : > { %v2345_v47 = vpop.eup %2344  ;;  %v1240_v43 = vpack.c.bf16 %v1216_v0, %v1212_v20  ;;  %v1183_v44 = vadd.f32 1.0, %v2343_v29  ;;  %2370 = verf.f32 %v1134_v22  ;;  %v1136_v9 = vmul.f32 0.70710677, %v3072_v54  ;;  %1544 = vmatprep.mubr.bf16.mxu0 %v1234_v45 }
 0x248   : > { %v2347_v49 = vpop.eup %2346  ;;  %v1186_v10 = vadd.f32 1.0, %v2345_v47  ;;  %v1177_v23 = vadd.f32 1.0, %v2337_v46  ;;  %v1090_v57 = vmul.f32 0.5, %v2971_v58  ;;  %2372 = verf.f32 %v1131_v48  ;;  %1609 = vmatprep.mubr.bf16.mxu1 %v1236_v11  ;;  %1545 = vmatmul.mubr.bf16.vlgmr.msra.gmra.mxu0 %v1233_v30 }
 0x249   : > { %v2349_v32 = vpop.eup %2348  ;;  %v1188_v39 = vadd.f32 1.0, %v2347_v49  ;;  %v1179_v35 = vadd.f32 1.0, %v2339_v63  ;;  %v1094_v3 = vmul.f32 0.5, %v3011_v27  ;;  %2374 = verf.f32 %v1136_v9  ;;  %1610 = vmatmul.mubr.bf16.vlgmr.msra.gmra.mxu1 %v1235_v5  ;;  %1552 = vmatprep.mubr.bf16.mxu0 %v1238_v34 }
 0x24a   : > { %v2351_v31 = vpop.eup %2350  ;;  %v1213_v29 = vmul.f32 %v1181_v25, %v2995_v15  ;;  %v1092_v14 = vmul.f32 0.5, %v2974_v56  ;;  %v1096_v46 = vmul.f32 0.5, %v3014_v33  ;;  %1617 = vmatprep.mubr.bf16.mxu1 %v1240_v43  ;;  %v1083_v30 = vmul.f32 0.5, %v2956_v28 }
 0x24b   : > { %v2353_v55 = vpop.eup %2352  ;;  %v1215_v63 = vmul.f32 %v1183_v44, %v2997_v12  ;;  %v1218_v13 = vmul.f32 %v1186_v10, %v1090_v57  ;;  %v1209_v16 = vmul.f32 %v1177_v23, %v2985_v8  ;;  %v1185_v25 = vadd.f32 1.0, %v2349_v32 }
 0x24c   : > { %v2355_v53 = vpop.eup %2354  ;;  %v1190_v36 = vadd.f32 1.0, %v2353_v55  ;;  %v1220_v5 = vmul.f32 %v1188_v39, %v1092_v14  ;;  %v1211_v7 = vmul.f32 %v1179_v35, %v1083_v30  ;;  %v1187_v45 = vadd.f32 1.0, %v2351_v31 }
 0x24d   : > { %v2357_v1 = vpop.eup %2356  ;;  %v1192_v58 = vadd.f32 1.0, %v2355_v53  ;;  %v1237_v56 = vpack.c.bf16 %v1213_v29, %v1209_v16  ;;  %v1093_v28 = vmul.f32 0.5, %v3002_v18  ;;  %v1095_v12 = vmul.f32 0.5, %v3008_v26 }
 0x24e   : > { %v2359_v0 = vpop.eup %2358  ;;  %v1222_v27 = vmul.f32 %v1190_v36, %v1094_v3  ;;  %v1189_v15 = vadd.f32 1.0, %v2357_v1  ;;  %v1239_v22 = vpack.c.bf16 %v1215_v63, %v1211_v7  ;;  %v1089_v34 = vmul.f32 0.5, %v2981_v62 }
 0x24f   : > { %v1224_v21 = vmul.f32 %v1192_v58, %v1096_v46  ;;  %v1191_v20 = vadd.f32 1.0, %v2359_v0  ;;  %v2361_v33 = vpop.eup %2360  ;;  %v1091_v43 = vmul.f32 0.5, %v2988_v59  ;;  %v1098_v18 = vmul.f32 0.5, %v3034_v19 }
 0x250   : > { %v1242_v47 = vpack.c.bf16 %v1222_v27, %v1218_v13  ;;  %v2363_v49 = vpop.eup %2362  ;;  %1553 = vmatmul.mubr.bf16.gmra.mxu0 %v1237_v56  ;;  %v1221_v44 = vmul.f32 %v1189_v15, %v1093_v28  ;;  %v1217_v31 = vmul.f32 %v1185_v25, %v1089_v34  ;;  %v1100_v57 = vmul.f32 0.5, %v3049_v50 }
 0x251   : > { %v1244_v48 = vpack.c.bf16 %v1224_v21, %v1220_v5  ;;  %v2365_v11 = vpop.eup %2364  ;;  %1618 = vmatmul.mubr.bf16.gmra.mxu1 %v1239_v22  ;;  %v1223_v10 = vmul.f32 %v1191_v20, %v1095_v12  ;;  %v1194_v55 = vadd.f32 1.0, %v2363_v49  ;;  %v1219_v23 = vmul.f32 %v1187_v45, %v1091_v43 }
 0x252   : > { %1560 = vmatprep.mubr.bf16.mxu0 %v1242_v47  ;;  %v2367_v8 = vpop.eup %2366  ;;  %v1196_v39 = vadd.f32 1.0, %v2365_v11  ;;  %v1102_v53 = vmul.f32 0.5, %v3061_v24  ;;  %v1104_v59 = vmul.f32 0.5, %v3072_v54  ;;  %v1241_v36 = vpack.c.bf16 %v1221_v44, %v1217_v31 }
 0x253   : > { %1625 = vmatprep.mubr.bf16.mxu1 %v1244_v48  ;;  %v2369_v9 = vpop.eup %2368  ;;  %v1197_v3 = vadd.f32 1.0, %v2367_v8  ;;  %v1243_v1 = vpack.c.bf16 %v1223_v10, %v1219_v23  ;;  %v1226_v29 = vmul.f32 %v1194_v55, %v1098_v18  ;;  %v1193_v0 = vadd.f32 1.0, %v2361_v33 }
 0x254   : > { %v2371_v32 = vpop.eup %2370  ;;  %v1199_v14 = vadd.f32 1.0, %v2369_v9  ;;  %v1101_v19 = vmul.f32 0.5, %v3052_v41  ;;  %v1103_v30 = vmul.f32 0.5, %v3058_v6  ;;  %v1228_v63 = vmul.f32 %v1196_v39, %v1100_v57 }
 0x255   : > { %v2373_v26 = vpop.eup %2372  ;;  %v1198_v35 = vadd.f32 1.0, %v2371_v32  ;;  %v1097_v27 = vmul.f32 0.5, %v3027_v17  ;;  %v1099_v16 = vmul.f32 0.5, %v3046_v42  ;;  %v3098_v17 = vld [vmem:[%s3203_s7] ss:$0 sm:$0xff] }
 0x256   : > { %v2375_v62 = vpop.eup %2374  ;;  %v1195_v50 = vadd.f32 1.0, %v2373_v26  ;;  %v1229_v54 = vmul.f32 %v1197_v3, %v1101_v19  ;;  %v1231_v5 = vmul.f32 %v1199_v14, %v1103_v30  ;;  %v2627_v12 = vmov 1935823168  }
 0x257   : > { %v1230_v46 = vmul.f32 %v1198_v35, %v1102_v53  ;;  %v1200_v58 = vadd.f32 1.0, %v2375_v62  ;;  %v1225_v7 = vmul.f32 %v1193_v0, %v1097_v27  ;;  %v1651_v11 = vunpack.c.l.s4 %v2627_v12 }
 0x258   : > { %1561 = vmatmul.mubr.bf16.gmra.mxu0 %v1241_v36  ;;  %v1227_v47 = vmul.f32 %v1195_v50, %v1099_v16 }
 0x259   : > { %v1232_v24 = vmul.f32 %v1200_v58, %v1104_v59  ;;  %1626 = vmatmul.mubr.bf16.gmra.mxu1 %v1243_v1  ;;  %v1246_v13 = vpack.c.bf16 %v1230_v46, %v1226_v29  ;;  %v1245_v41 = vpack.c.bf16 %v1229_v54, %v1225_v7  ;;  %v1652_v18 = vunpack.c.0.s8 %v1651_v11 }
 0x25a   : > { %v1247_v15 = vpack.c.bf16 %v1231_v5, %v1227_v47 }
 0x25b   : > { %1568 = vmatprep.mubr.bf16.mxu0 %v1246_v13  ;;  %v1248_v21 = vpack.c.bf16 %v1232_v24, %v1228_v63  ;;  %v3106_v29 = vsub.s32 %v1652_v18, %v2865_v40 }
 0x25d   : > { %1633 = vmatprep.mubr.bf16.mxu1 %v1248_v21 }
 0x260   : > { %1569 = vmatmul.mubr.bf16.gmra.mxu0 %v1245_v41 }
 0x261   : > { %1634 = vmatmul.mubr.bf16.gmra.mxu1 %v1247_v15 }
 0x308   : > { %v2051_v6 = vpop.f32.mrf.mxu0 }
 0x309   : > { %v2091_v20 = vpop.f32.mrf.mxu1 }
 0x30a   : > { %v2052_v56 = vpop.f32.mrf.mxu0 }
 0x30b   : > { %v2092_v48 = vpop.f32.mrf.mxu1  ;;  %v2053_v33 = vadd.f32 %v2052_v56, %v2051_v6 }
 0x30c   : > { %v2054_v22 = vpop.f32.mrf.mxu0  ;;  %v2093_v10 = vadd.f32 %v2092_v48, %v2091_v20 }
 0x30d   : > { %v2094_v42 = vpop.f32.mrf.mxu1  ;;  %v1547_v28 = vadd.f32 %v2053_v33, %v3098_v17 }
 0x30e   : > { %v2055_v49 = vpop.f32.mrf.mxu0 }
 0x30f   : > { %v2056_v25 = vadd.f32 %v2055_v49, %v2054_v22  ;;  %v2095_v45 = vpop.f32.mrf.mxu1  ;;  %v1612_v23 = vadd.f32 %v2093_v10, %v1547_v28 }
 0x310   : > { %v2057_v8 = vpop.f32.mrf.mxu0  ;;  %v2096_v43 = vadd.f32 %v2095_v45, %v2094_v42 }
 0x311   : > { %v1550_v34 = vadd.f32 %v2056_v25, %v3098_v17  ;;  %v2097_v44 = vpop.f32.mrf.mxu1  ;;  %v1642_v1 = vadd.f32 %v1612_v23, %v2887_v37 }
 0x312   : > { %v2058_v9 = vpop.f32.mrf.mxu0 }
 0x313   : > { %v1615_v55 = vadd.f32 %v2096_v43, %v1550_v34  ;;  %v2059_v32 = vadd.f32 %v2058_v9, %v2057_v8  ;;  %v2098_v31 = vpop.f32.mrf.mxu1  ;;  %v1656_v24 = vrot.slane %v1642_v1, %v3106_v29 }
 0x314   : > { %v2060_v26 = vpop.f32.mrf.mxu0  ;;  %v2099_v39 = vadd.f32 %v2098_v31, %v2097_v44 }
 0x315   : > { %v1555_v57 = vadd.f32 %v2059_v32, %v3098_v17  ;;  %v2100_v53 = vpop.f32.mrf.mxu1  ;;  %v1643_v35 = vadd.f32 %v1615_v55, %v2889_v38 }
 0x316   : > { %v2061_v62 = vpop.f32.mrf.mxu0 }
 0x317   : > { %v1620_v3 = vadd.f32 %v2099_v39, %v1555_v57  ;;  %v2062_v59 = vadd.f32 %v2061_v62, %v2060_v26  ;;  %v2101_v36 = vpop.f32.mrf.mxu1  ;;  %v1663_v19 = vrot.slane %v1643_v35, %v3106_v29 }
 0x318   : > { %v2063_v14 = vpop.f32.mrf.mxu0  ;;  %v2102_v58 = vadd.f32 %v2101_v36, %v2100_v53 }
 0x319   : > { %v1558_v46 = vadd.f32 %v2062_v59, %v3098_v17  ;;  %v2103_v0 = vpop.f32.mrf.mxu1  ;;  %v1644_v50 = vadd.f32 %v1620_v3, %v2897_v51  ;;  %v1714_v54 = vcombine.low %v1656_v24, %v1663_v19  ;;  %v1715_v16 = vcombine.high %v1656_v24, %v1663_v19 }
 0x31a   : > { %v2064_v30 = vpop.f32.mrf.mxu0 }
 0x31b   : > { %v1623_v38 = vadd.f32 %v2102_v58, %v1558_v46  ;;  %v2104_v63 = vpop.f32.mrf.mxu1  ;;  %v2065_v13 = vadd.f32 %v2064_v30, %v2063_v14  ;;  %v1670_v21 = vrot.slane %v1644_v50, %v3106_v29  ;;  %v1724_v33 = vrot.slane %v1714_v54, %v2880_v4  ;;  %v3237_v14 = vld [vmem:[#allocation19_spill] sm:$0xff] }
 0x31c   : > { %v2066_v37 = vpop.f32.mrf.mxu0  ;;  %v1731_v22 = vrot.slane %v1715_v16, %v2880_v4  ;;  %v2105_v42 = vadd.f32 %v2104_v63, %v2103_v0 }
 0x31d   : > { %v1645_v40 = vadd.f32 %v1623_v38, %v2899_v52  ;;  %v2106_v27 = vpop.f32.mrf.mxu1  ;;  %v1563_v51 = vadd.f32 %v2065_v13, %v3098_v17 }
 0x31e   : > { %v2067_v5 = vpop.f32.mrf.mxu0 }
 0x31f   : > { %v1677_v7 = vrot.slane %v1645_v40, %v3106_v29  ;;  %v2068_v47 = vadd.f32 %v2067_v5, %v2066_v37  ;;  %v2107_v41 = vpop.f32.mrf.mxu1  ;;  %v1628_v8 = vadd.f32 %v2105_v42, %v1563_v51 }
 0x320   : > { %v2069_v15 = vpop.f32.mrf.mxu0  ;;  %v2108_v48 = vadd.f32 %v2107_v41, %v2106_v27 }
 0x321   : > { %v1716_v6 = vcombine.low %v1670_v21, %v1677_v7  ;;  %v1717_v20 = vcombine.high %v1670_v21, %v1677_v7  ;;  %v1566_v56 = vadd.f32 %v2068_v47, %v3098_v17  ;;  %v2109_v52 = vpop.f32.mrf.mxu1  ;;  %v1646_v53 = vadd.f32 %v1628_v8, %v2907_v60 }
 0x322   : > { %v2070_v49 = vpop.f32.mrf.mxu0 }
 0x323   : > { %v1738_v25 = vrot.slane %v1716_v6, %v2880_v4  ;;  %v1745_v45 = vrot.slane %v1717_v20, %v2880_v4  ;;  %v1631_v28 = vadd.f32 %v2108_v48, %v1566_v56  ;;  %v2071_v12 = vadd.f32 %v2070_v49, %v2069_v15  ;;  %v2110_v11 = vpop.f32.mrf.mxu1 }
 0x324   : > { %v2072_v34 = vpop.f32.mrf.mxu0  ;;  %v2111_v31 = vadd.f32 %v2110_v11, %v2109_v52  ;;  %v1684_v1 = vrot.slane %v1646_v53, %v3106_v29 }
 0x325   : > { %v1746_v43 = vcombine.low %v1724_v33, %v1738_v25  ;;  %v1747_v44 = vcombine.high %v1724_v33, %v1738_v25  ;;  %v1748_v10 = vcombine.low %v1731_v22, %v1745_v45  ;;  %v1749_v9 = vcombine.high %v1731_v22, %v1745_v45  ;;  %v2112_v55 = vpop.f32.mrf.mxu1 }
 0x326   : > { %v1571_v32 = vadd.f32 %v2071_v12, %v3098_v17  ;;  %v2073_v23 = vpop.f32.mrf.mxu0  ;;  %v1647_v18 = vadd.f32 %v1631_v28, %v2909_v61 }
 0x327   : > { %1794 = vst [vmem:[%s3123_s16] sm:$0xff] %v1746_v43  ;;  %1795 = vst [vmem:[%s3123_s16 + $0x8] sm:$0xff] %v1747_v44  ;;  %v2074_v26 = vadd.f32 %v2073_v23, %v2072_v34  ;;  %v2113_v57 = vpop.f32.mrf.mxu1 }
 0x328   : > { %1796 = vst [vmem:[%s3123_s16 + $0x10] sm:$0xff] %v1748_v10  ;;  %1797 = vst [vmem:[%s3123_s16 + $0x18] sm:$0xff] %v1749_v9  ;;  %v1636_v39 = vadd.f32 %v2111_v31, %v1571_v32  ;;  %v2114_v62 = vadd.f32 %v2113_v57, %v2112_v55  ;;  %v1691_v3 = vrot.slane %v1647_v18, %v3106_v29 }
 0x329   : > { %v1574_v35 = vadd.f32 %v2074_v26, %v3098_v17 }
 0x32a   : > { %v1648_v59 = vadd.f32 %v1636_v39, %v2915_v2  ;;  %v1750_v61 = vcombine.low %v1684_v1, %v1691_v3  ;;  %v1751_v58 = vcombine.high %v1684_v1, %v1691_v3 }
 0x32b   : > { %v1639_v36 = vadd.f32 %v2114_v62, %v1574_v35 }
 0x32c   : > { %v1698_v0 = vrot.slane %v1648_v59, %v3106_v29  ;;  %v1760_v2 = vrot.slane %v1750_v61, %v2880_v4  ;;  %v1767_v30 = vrot.slane %v1751_v58, %v2880_v4 }
 0x32d   : > { %v1649_v46 = vadd.f32 %v1639_v36, %v3237_v14 }
 0x32f   : > { %v1705_v19 = vrot.slane %v1649_v46, %v3106_v29 }
 0x331   : > { %v1752_v60 = vcombine.low %v1698_v0, %v1705_v19  ;;  %v1753_v17 = vcombine.high %v1698_v0, %v1705_v19 }
 0x333   : > { %v1774_v50 = vrot.slane %v1752_v60, %v2880_v4  ;;  %v1781_v38 = vrot.slane %v1753_v17, %v2880_v4 }
 0x335   : > { %v1782_v29 = vcombine.low %v1760_v2, %v1774_v50  ;;  %v1783_v63 = vcombine.high %v1760_v2, %v1774_v50  ;;  %v1784_v24 = vcombine.low %v1767_v30, %v1781_v38  ;;  %v1785_v13 = vcombine.high %v1767_v30, %v1781_v38 }
 0x337   : > { %1798 = vst [vmem:[%s3123_s16 + $0x20] sm:$0xff] %v1782_v29  ;;  %1799 = vst [vmem:[%s3123_s16 + $0x28] sm:$0xff] %v1783_v63 }
 0x338   : > { %1800 = vst [vmem:[%s3123_s16 + $0x30] sm:$0xff] %v1784_v24  ;;  %1801 = vst [vmem:[%s3123_s16 + $0x38] sm:$0xff] %v1785_v13 }
 0x339   : > { %2547 = shalt.err (!%p2544_p2)
}
 0x33a   : > { %s2548_s13 = scalar_lea.hbm %s3147_s24, 1024  ;;  %s2552_s19 = scalar_lea.hbm %s3204_s8, 2048 }
 0x33b   : > { %p2549_p13 = scmp.ne.s32.totalorder %s3147_s24, %s2548_s13  ;;  %p2553_p5 = scmp.lt.s32.totalorder %s3147_s24, %s3204_s8 }
 0x33c   : > { %p2554_p12 = scmp.lt.s32.totalorder %s2552_s19, %s2548_s13 }
 0x33d   : > { %p2550_p11 = pnand %p2549_p13, %p3238_p7 }
 0x33e   : > { %p2555_p3 = por %p2554_p12, %p2553_p5 }
 0x33f   : > { %p2551_p0 = pneg %p2550_p11 }
 0x341   : > { %p2556_p10 = pnand %p2555_p3, %p2551_p0 }
 0x343   : > { %2559 = shalt.err (!%p2556_p10)
}
 0x344   : > { %s2629_s15 = smov 512   ;;  %s2630_s17 = smov 1024  }
 0x345   : > { %s2631_s2 = smov 32  }
 0x346   : > { %2137 = dma.vmem_to_hbm [thread:$0]  (%p3238_p7), %s3149_s26, 1024, %s3147_s24, %s1803_s9, %s2629_s15, %s2630_s17, %s2631_s2  }
 0x347 PF: > { %s1831_s20 = sand.u32 1, %s2598_s27   ;;  %p3239_p1 = scmp.ne.s32.totalorder %s3216_s12, 0 }
 0x348   : > { %p3240_p9 = scmp.ge.s32.totalorder %s2610_s30, 2  ;;  %s1832_s22 = scalar_lea.sflag [#allocation4], %s1831_s20 }
 0x34a   : > { %p2160_p4 = pnand %p3240_p9, %p3239_p1 }
 0x34c   : > { %p2161_p8 = pneg %p2160_p4 }
 0x34e   : > { %2593 = dma.done.wait (%p2161_p8), %s1832_s22, 1024  }
 0x34f   : > { %2595 = vsyncadd (%p2161_p8), %s1832_s22, 4294966272  ;;  %p24_p6 = scmp.ge.s32.totalorder %s2773_s18, 4   ;;  %s3241_s27 = smov %s2602_s28 }
 0x350   : > { %s3242_s28 = smov %s2606_s29  ;;  %s3243_s29 = smov %s2793_s23 }
 0x351   : > { %s3244_s30 = smov %s2773_s18  ;;  %26 = sbr.rel (!%p24_p6) target bundleno = 11 (0xb), region = 117 }
 0x356   :  { %1837 = vsyncpa [#allocation3], 1 }
 0x357   :  { %1839 = vsyncpa [#allocation3 + $0x1], 1 }
 0x358   :  { %1840 = vsyncpa [#allocation6], 1 }
 0x359   :  { %1841 = vsyncpa [#allocation9], 1 }
 0x35a   :  { %1842 = vsyncpa [#allocation12], 1 }
 0x35b   :  { %1843 = vsyncpa [#allocation4], 1 }
 0x35c   :  { %1845 = vsyncpa [#allocation4 + $0x1], 1 }

// kernel: tpu_custom_call.1
= control target key start
LH: loop header
LB: loop body
LE: loop exit
PB: predicated region body
PF: predicated region fallthrough
CT: control target
= control target key end

     0   :  { %s3196_s0 = inlined_call_operand.hbm [shape: bf16[16,1024], index: 0, kind: input, shape index: {}]   ;;  %s3197_s1 = inlined_call_operand.hbm [shape: bf16[16,16], index: 1, kind: input, shape index: {}]   ;;  %s3198_s2 = inlined_call_operand.hbm [shape: f32[1,512], index: 2, kind: input, shape index: {}]   ;;  %s3199_s3 = inlined_call_operand.hbm [shape: f32[16,512], index: 3, kind: input, shape index: {}]   ;;  %s3200_s4 = inlined_call_operand.hbm [shape: bf16[128,512], index: 4, kind: input, shape index: {}]   ;;  %s3201_s5 = inlined_call_operand.vmem [shape: f32[1,512], index: 5, kind: input, shape index: {}]   ;;  %s3202_s6 = inlined_call_operand.hbm [shape: bf16[512,128], index: 6, kind: input, shape index: {}]   ;;  %s3203_s7 = inlined_call_operand.vmem [shape: f32[1,128], index: 7, kind: input, shape index: {}]   ;;  %s3204_s8 = inlined_call_operand.hbm [shape: f32[16,1024], index: 8, kind: output, shape index: {}]  }
   0x1   :  { %3213 = sst [smem:[#allocation20_spill]] %s3197_s1 }
   0x2   :  { %3214 = sst [smem:[#allocation21_spill]] %s3198_s2 }
   0x3   :  { %13 = vsyncpa [#allocation3], 0 }
   0x4   :  { %15 = vsyncpa [#allocation3 + $0x1], 0 }
   0x5   :  { %16 = vsyncpa [#allocation6], 0 }
   0x6   :  { %17 = vsyncpa [#allocation9], 0 }
   0x7   :  { %18 = vsyncpa [#allocation12], 0 }
   0x8   :  { %19 = vsyncpa [#allocation4], 0 }
   0x9   :  { %21 = vsyncpa [#allocation4 + $0x1], 0  ;;  %s2677_s27 = smov 0   ;;  %s2679_s28 = smov 0  }
   0xa   :  { %s2681_s29 = smov 0   ;;  %s2683_s30 = smov 0  }
   0xb LB: > { %s2698_s9 = sadd.s32 4294967295, %s2610_s30   ;;  %s1937_s10 = sadd.s32 4294967294, %s2610_s30   ;;  %s2610_s30 = sphi %s2683_s30, %s3244_s30   ;;  %s2606_s29 = sphi %s2681_s29, %s3243_s29   ;;  %s2602_s28 = sphi %s2679_s28, %s3242_s28   ;;  %s2598_s27 = sphi %s2677_s27, %s3241_s27  }
   0xc   : > { %p47_p0 = scmp.ne.s32.totalorder %s2602_s28, %s2598_s27  ;;  %p3205_p1 = scmp.eq.s32.totalorder %s2698_s9, 0 }
   0xd   : > { %p224_p3 = scmp.eq.s32.totalorder %s1937_s10, 1  ;;  %p1938_p5 = scmp.ge.s32.totalorder %s2610_s30, 1 }
   0xe   : > { %p2707_p4 = por %p3205_p1, %p47_p0  ;;  %p231_p7 = scmp.lt.s32.totalorder %s2610_s30, 3 }
   0xf   : > { %p2712_p6 = por %p224_p3, %p47_p0  ;;  %s2612_s14 = smov [#allocation5]  }
  0x10   : > { %s3215_s11 = scalar_select %p2707_p4, 1, 0 }
  0x11   : > { %s3216_s12 = scalar_select %p2712_p6, 1, 0 }
  0x12   : > { %p2717_p8 = pnand %p1938_p5, %p231_p7  ;;  %s243_s15 = sshll.u32 %s2612_s14, 4  ;;  %s244_s15 = int_to_ptr.vmem [resolvable:$true] %s243_s15 }
  0x13   : > { %s2613_s17 = smov [#allocation8]   ;;  %s2387_s20 = scalar_lea.vmem %s244_s15, 128 }
  0x14   : > { %s3217_s13 = scalar_select %p2717_p8, 1, 0 }
  0x15   : > { %p2139_p9 = pneg %p2717_p8  ;;  %s267_s18 = sshll.u32 %s2613_s17, 4  ;;  %s268_s18 = int_to_ptr.vmem [resolvable:$true] %s267_s18 }
  0x16   : > { %p2388_p13 = scmp.ne.s32.totalorder %s244_s15, %s2387_s20  ;;  %p2395_p5 = scmp.lt.s32.totalorder %s244_s15, %s244_s15 }
  0x17   : > { %p2726_p11 = pnand %p2139_p9, %p3205_p1  ;;  %p2396_p7 = scmp.lt.s32.totalorder %s2387_s20, %s2387_s20 }
  0x19   : > { %p2732_p12 = pneg %p2726_p11  ;;  %p2397_p9 = por %p2396_p7, %p2395_p5 }
  0x1b   : > { %p2390_p0 = pnand %p2388_p13, %p2732_p12 }
  0x1d   : > { %p2391_p3 = pneg %p2390_p0 }
  0x1f   : > { %p2398_p10 = pnand %p2397_p9, %p2391_p3 }
  0x21   : > { %2401 = shalt.err (!%p2398_p10)
}
  0x22   : > { %s2614_s21 = smov 64   ;;  %s2615_s22 = smov 4  }
  0x23   : > { %s3220_s1 = sld [smem:[#allocation20_spill]]  ;;  %s2413_s25 = scalar_lea.vmem %s268_s18, 1024 }
  0x24   : > { %p2414_p13 = scmp.ne.s32.totalorder %s268_s18, %s2413_s25  ;;  %p2421_p5 = scmp.lt.s32.totalorder %s268_s18, %s268_s18 }
  0x25   : > { %p2422_p3 = scmp.lt.s32.totalorder %s2413_s25, %s2413_s25 }
  0x26   : > { %p2416_p0 = pnand %p2414_p13, %p2732_p12 }
  0x27   : > { %p2423_p10 = por %p2422_p3, %p2421_p5 }
  0x28   : > { %p2417_p1 = pneg %p2416_p0 }
  0x29   : > { %2142 = dma.hbm_to_vmem [thread:$0]  (!%p2726_p11), %s3220_s1, 128, %s244_s15, [#allocation6], %s2614_s21, %s2614_s21, %s2615_s22  }
  0x2a   : > { %p2424_p7 = pnand %p2423_p10, %p2417_p1 }
  0x2c   : > { %2427 = shalt.err (!%p2424_p7)
}
  0x2d   : > { %s3208_s26 = smov 512   ;;  %s2617_s10 = smov 32  }
  0x2e   : > { %2148 = dma.hbm_to_vmem [thread:$0]  (!%p2726_p11), %s3199_s3, 1024, %s268_s18, [#allocation9], %s3208_s26, %s3208_s26, %s2617_s10  }
  0x2f   : > { %s2618_s15 = smov [#allocation7]   ;;  %s2619_s23 = smov [#allocation10]  }
  0x30   : > { %s257_s20 = sshll.u32 %s2618_s15, 4  ;;  %s280_s24 = sshll.u32 %s2619_s23, 4  ;;  %s258_s20 = int_to_ptr.vmem [resolvable:$true] %s257_s20  ;;  %s281_s24 = int_to_ptr.vmem [resolvable:$true] %s280_s24 }
  0x31   : > { %s2439_s25 = scalar_lea.vmem %s258_s20, 64  ;;  %p2447_p0 = scmp.lt.s32.totalorder %s258_s20, %s258_s20 }
  0x32   : > { %p2440_p1 = scmp.ne.s32.totalorder %s258_s20, %s2439_s25  ;;  %p2448_p5 = scmp.lt.s32.totalorder %s2439_s25, %s2439_s25 }
  0x34   : > { %p2442_p9 = pnand %p2440_p1, %p2732_p12  ;;  %p2449_p3 = por %p2448_p5, %p2447_p0 }
  0x36   : > { %p2443_p13 = pneg %p2442_p9 }
  0x38   : > { %p2450_p10 = pnand %p2449_p3, %p2443_p13 }
  0x3a   : > { %2453 = shalt.err (!%p2450_p10)
}
  0x3b   : > { %s3221_s2 = sld [smem:[#allocation21_spill]]  ;;  %s2465_s10 = scalar_lea.vmem %s281_s24, 4096 }
  0x3c   : > { %p2466_p7 = scmp.ne.s32.totalorder %s281_s24, %s2465_s10  ;;  %p2473_p4 = scmp.lt.s32.totalorder %s281_s24, %s281_s24 }
  0x3d   : > { %p2474_p1 = scmp.lt.s32.totalorder %s2465_s10, %s2465_s10 }
  0x3e   : > { %p2468_p2 = pnand %p2466_p7, %p2732_p12 }
  0x3f   : > { %p2475_p9 = por %p2474_p1, %p2473_p4 }
  0x40   : > { %p2469_p6 = pneg %p2468_p2 }
  0x41   : > { %2145 = dma.hbm_to_vmem [thread:$0]  (!%p2726_p11), %s3221_s2, 64, %s258_s20, [#allocation6]  }
  0x42   : > { %p2476_p8 = pnand %p2475_p9, %p2469_p6 }
  0x44   : > { %2479 = shalt.err (!%p2476_p8)
}
  0x45   : > { %s3209_s17 = smov 256   ;;  %s3210_s15 = smov 16  }
  0x46   : > { %2151 = dma.hbm_to_vmem [thread:$0]  (!%p2726_p11), %s3200_s4, 4096, %s281_s24, [#allocation9], %s3209_s17, %s3209_s17, %s3210_s15  }
  0x47   : > { %s2622_s25 = smov [#allocation11]   ;;  %s2773_s18 = sadd.s32 1, %s2610_s30  }
  0x48   : > { %s296_s14 = sshll.u32 %s2622_s25, 4  ;;  %s297_s14 = int_to_ptr.vmem [resolvable:$true] %s296_s14 }
  0x49   : > { %s2491_s10 = scalar_lea.vmem %s297_s14, 4096  ;;  %p2499_p8 = scmp.lt.s32.totalorder %s297_s14, %s297_s14 }
  0x4a   : > { %p2492_p2 = scmp.ne.s32.totalorder %s297_s14, %s2491_s10  ;;  %p2500_p13 = scmp.lt.s32.totalorder %s2491_s10, %s2491_s10 }
  0x4c   : > { %p2494_p4 = pnand %p2492_p2, %p2732_p12  ;;  %p2501_p0 = por %p2500_p13, %p2499_p8 }
  0x4e   : > { %p2495_p6 = pneg %p2494_p4 }
  0x50   : > { %p2502_p5 = pnand %p2501_p0, %p2495_p6 }
  0x52   : > { %2505 = shalt.err (!%p2502_p5)
}
  0x53   : > { %2154 = dma.hbm_to_vmem [thread:$0]  (!%p2726_p11), %s3202_s6, 4096, %s297_s14, [#allocation12], %s2614_s21, %s2614_s21, %s2615_s22  }
  0x54   : > { %s31_s19 = ssub.s32 %s2610_s30, %s2773_s18  ;;  %s34_s16 = sadd.s32 1, %s2606_s29 }
  0x55   : > { %p32_p12 = scmp.eq.s32.totalorder %s31_s19, 0  ;;  %p41_p3 = scmp.ne.s32.totalorder %s2606_s29, %s2602_s28 }
  0x56   : > { %p42_p10 = scmp.eq.s32.totalorder %s2610_s30, 0  ;;  %p2168_p7 = scmp.lt.s32.totalorder %s2610_s30, 2 }
  0x57   : > { %s2793_s23 = scalar_select %p32_p12, %s2606_s29, %s34_s16  }
  0x58   : > { %p43_p1 = por %p42_p10, %p41_p3  ;;  %p3222_p9 = scmp.eq.s32.totalorder %s2698_s9, 1 }
  0x59   : > { %s313_s10 = sand.u32 1, %s2606_s29   ;;  %s2033_s24 = sshll.u32 %s2610_s30, 8 }
  0x5a   : > { %p2797_p2 = por %p3222_p9, %p41_p3  ;;  %s1945_s20 = sshll.u32 %s313_s10, 5 }
  0x5b   : > { %s2806_s21 = scalar_lea.hbm %s3196_s0, %s2033_s24  ;;  %s317_s22 = scalar_lea.vmem [#allocation2], %s1945_s20 }
  0x5c   : > { %s3223_s25 = scalar_select %p2797_p2, 1, 0 }
  0x5d   : > { %s324_s14 = sshll.u32 %s317_s22, 4  ;;  %p2808_p11 = pnand %p2168_p7, %p43_p1  ;;  %s2812_s14 = int_to_ptr.vmem [resolvable:$true] %s324_s14 }
  0x5e   : > { %s2814_s16 = scalar_lea.sflag [#allocation3], %s313_s10  ;;  %s2506_s15 = scalar_lea.hbm %s2806_s21, 512 }
  0x5f   : > { %p2507_p4 = scmp.ne.s32.totalorder %s2806_s21, %s2506_s15  ;;  %p2508_p6 = pneg %p2808_p11 }
  0x60   : > { %s2511_s24 = scalar_lea.hbm %s3196_s0, 1024  ;;  %p2512_p0 = scmp.lt.s32.totalorder %s2806_s21, %s3196_s0 }
  0x61   : > { %p2509_p8 = pnand %p2508_p6, %p2507_p4  ;;  %p2513_p5 = scmp.lt.s32.totalorder %s2511_s24, %s2506_s15 }
  0x63   : > { %p2510_p13 = pneg %p2509_p8  ;;  %p2514_p12 = por %p2513_p5, %p2512_p0 }
  0x65   : > { %p2515_p3 = pnand %p2514_p12, %p2510_p13 }
  0x67   : > { %2518 = shalt.err (!%p2515_p3)
}
  0x68   : > { %s2519_s10 = scalar_lea.vmem %s2812_s14, 512  ;;  %s2623_s1 = smov [#allocation2]  }
  0x69   : > { %p2520_p10 = scmp.ne.s32.totalorder %s2812_s14, %s2519_s10  ;;  %s2524_s2 = sshll.u32 %s2623_s1, 4  ;;  %s2525_s2 = int_to_ptr.vmem [resolvable:$false] %s2524_s2 }
  0x6a   : > { %s2526_s26 = scalar_lea.vmem %s2525_s2, 1024  ;;  %p2527_p9 = scmp.lt.s32.totalorder %s2812_s14, %s2525_s2 }
  0x6b   : > { %p2522_p7 = pnand %p2520_p10, %p2508_p6  ;;  %p2528_p4 = scmp.lt.s32.totalorder %s2526_s26, %s2519_s10 }
  0x6d   : > { %p2523_p1 = pneg %p2522_p7  ;;  %p2529_p8 = por %p2528_p4, %p2527_p9 }
  0x6f   : > { %p2530_p2 = pnand %p2529_p8, %p2523_p1 }
  0x71   : > { %2533 = shalt.err (!%p2530_p2)
}
  0x72   : > { %s3225_s15 = smov 16   ;;  %s3226_s17 = smov 256  }
  0x73   : > { %s3227_s24 = smov 512   ;;  %p3228_p6 = scmp.ne.s32.totalorder %s3217_s13, 0 }
  0x74   : > { %2158 = dma.hbm_to_vmem [thread:$0]  (!%p2808_p11), %s2806_s21, 512, %s2812_s14, %s2814_s16, %s3227_s24, %s3226_s17, %s3225_s15  }
  0x75   : > { %336 = sbr.rel (%p3228_p6) target bundleno = 839 (0x347), region = 52 }
  0x7a   : > { %s2841_s1 = sand.u32 1, %s2602_s28   ;;  %p3229_p2 = scmp.ne.s32.totalorder %s3215_s11, 0 }
  0x7b   : > { %s1949_s2 = sshll.u32 %s2841_s1, 5  ;;  %s339_s20 = scalar_lea.sflag [#allocation3], %s2841_s1 }
  0x7c   : > { %s342_s22 = scalar_lea.vmem [#allocation2], %s1949_s2 }
  0x7d   : > { %2577 = dma.done.wait (%p3229_p2), %s339_s20, 512  }
  0x7e   : > { %2579 = vsyncadd (%p3229_p2), %s339_s20, 4294966784  ;;  %p3230_p13 = scmp.eq.s32.totalorder %s2698_s9, 0 }
  0x80   : > { %2581 = dma.done.wait (%p3230_p13), [#allocation6], 192   ;;  %p3231_p11 = pmov %p3230_p13 }
  0x82   : > { %2583 = vsyncadd (%p3231_p11), [#allocation6], 4294967104  ;;  %p3232_p0 = pmov %p3231_p11 }
  0x84   : > { %2585 = dma.done.wait (%p3232_p0), [#allocation9], 5120   ;;  %p3233_p5 = pmov %p3232_p0 }
  0x85   : > { %p3234_p12 = pmov %p3232_p0 }
  0x86   : > { %2587 = vsyncadd (%p3233_p5), [#allocation9], 4294962176 }
  0x87   : > { %2589 = dma.done.wait (%p3234_p12), [#allocation12], 4096   ;;  %p3235_p3 = pmov %p3232_p0 }
  0x88   : > { %v2624_v0 = vmov 0   ;;  %v2225_v1 = vld [vmem:[%s342_s22 + $0x4] ss:$16 sps:$4 sm:$0xff]   ;;  %v2227_v2 = vld [vmem:[%s342_s22 + $0xc] ss:$16 sps:$4 sm:$0xff]   ;;  %vm429_vm0 = vcmask 130048   ;;  %v521_v39 = vlaneseq }
  0x89   : > { %2591 = vsyncadd (%p3235_p3), [#allocation12], 4294963200  ;;  %465 = vmatprep.mubr.bf16.mxu0 %v2624_v0  ;;  %508 = vmatprep.mubr.bf16.mxu1 %v2624_v0  ;;  %v2229_v3 = vld [vmem:[%s342_s22] ss:$16 sps:$4 sm:$0xff]   ;;  %v2230_v4 = vld [vmem:[%s342_s22 + $0x8] ss:$16 sps:$4 sm:$0xff]  }
  0x8a   : > { %447 = vmatprep.subr.bf16.mxu0 %v2225_v1  ;;  %490 = vmatprep.subr.bf16.mxu1 %v2227_v2  ;;  %v2231_v5 = vld [vmem:[#allocation5] sm:$0xff]   ;;  %v2232_v6 = vld [vmem:[#allocation10 + $0xe0] ss:$16 sps:$4 sm:$0xff]   ;;  %v2237_v9 = vld [vmem:[#allocation10 + $0xec] ss:$16 sps:$4 sm:$0xff]   ;;  %v2865_v40 = vshrl.u32 %v521_v39, 7 }
  0x8b   : > { %448 = vmatpush1.bf16.msra.mxu0 %v2229_v3  ;;  %491 = vmatpush1.bf16.msra.mxu1 %v2230_v4  ;;  %v2234_v7 = vld [vmem:[#allocation10 + $0xe4] ss:$16 sps:$4 sm:$0xff]   ;;  %v2235_v8 = vld [vmem:[#allocation10 + $0xe8] ss:$16 sps:$4 sm:$0xff]   ;;  %v2238_v11 = vld [vmem:[#allocation10 + $0xc0] ss:$16 sps:$4 sm:$0xff]  }
  0x8c   : > { %927 = vmatprep.subr.bf16.mxu0 %v2234_v7  ;;  %v2240_v10 = vld [vmem:[#allocation10 + $0xc4] ss:$16 sps:$4 sm:$0xff]   ;;  %1000 = vmatprep.subr.bf16.mxu1 %v2237_v9  ;;  %v2243_v12 = vld [vmem:[#allocation10 + $0xcc] ss:$16 sps:$4 sm:$0xff]   ;;  %v2241_v13 = vld [vmem:[#allocation10 + $0xc8] ss:$16 sps:$4 sm:$0xff]  }
  0x8d   : > { %v2246_v14 = vld [vmem:[#allocation10 + $0xa4] ss:$16 sps:$4 sm:$0xff]   ;;  %v2249_v15 = vld [vmem:[#allocation10 + $0xac] ss:$16 sps:$4 sm:$0xff]   ;;  %v2244_v16 = vld [vmem:[#allocation10 + $0xa0] ss:$16 sps:$4 sm:$0xff]  }
  0x8e   : > { %1961 = vmatmul.mubr.msk.bf16.vlgmr.msra.gmra.mxu0 %vm429_vm0, %v2231_v5  ;;  %1962 = vmatmul.mubr.msk.bf16.vlgmr.msra.gmra.mxu1 %vm429_vm0, %v2231_v5  ;;  %v2247_v17 = vld [vmem:[#allocation10 + $0xa8] ss:$16 sps:$4 sm:$0xff]   ;;  %v2252_v18 = vld [vmem:[#allocation10 + $0x84] ss:$16 sps:$4 sm:$0xff]   ;;  %v2250_v19 = vld [vmem:[#allocation10 + $0x80] ss:$16 sps:$4 sm:$0xff]  }
  0x8f   : > { %928 = vmatpush1.bf16.msra.mxu0 %v2232_v6  ;;  %1001 = vmatpush1.bf16.msra.mxu1 %v2235_v8  ;;  %v2255_v20 = vld [vmem:[#allocation10 + $0x8c] ss:$16 sps:$4 sm:$0xff]   ;;  %v2253_v21 = vld [vmem:[#allocation10 + $0x88] ss:$16 sps:$4 sm:$0xff]   ;;  %v2258_v22 = vld [vmem:[#allocation10 + $0x64] ss:$16 sps:$4 sm:$0xff]  }
  0x90   : > { %929 = vmatprep.subr.bf16.mxu0 %v2240_v10  ;;  %1002 = vmatprep.subr.bf16.mxu1 %v2243_v12  ;;  %v2261_v23 = vld [vmem:[#allocation10 + $0x6c] ss:$16 sps:$4 sm:$0xff]   ;;  %v2256_v24 = vld [vmem:[#allocation10 + $0x60] ss:$16 sps:$4 sm:$0xff]   ;;  %v2259_v25 = vld [vmem:[#allocation10 + $0x68] ss:$16 sps:$4 sm:$0xff]  }
  0x91   : > { %959 = vmatprep.mubr.bf16.mxu0 %v2624_v0  ;;  %1032 = vmatprep.mubr.bf16.mxu1 %v2624_v0  ;;  %v2264_v26 = vld [vmem:[#allocation10 + $0x44] ss:$16 sps:$4 sm:$0xff]   ;;  %v2267_v27 = vld [vmem:[#allocation10 + $0x4c] ss:$16 sps:$4 sm:$0xff]   ;;  %v2262_v28 = vld [vmem:[#allocation10 + $0x40] ss:$16 sps:$4 sm:$0xff]  }
  0x92   : > { %v2265_v29 = vld [vmem:[#allocation10 + $0x48] ss:$16 sps:$4 sm:$0xff]   ;;  %v2270_v30 = vld [vmem:[#allocation10 + $0x24] ss:$16 sps:$4 sm:$0xff]   ;;  %v2273_v31 = vld [vmem:[#allocation10 + $0x2c] ss:$16 sps:$4 sm:$0xff]  }
  0x93   : > { %930 = vmatpush1.bf16.msra.mxu0 %v2238_v11  ;;  %1003 = vmatpush1.bf16.msra.mxu1 %v2241_v13  ;;  %v2268_v32 = vld [vmem:[#allocation10 + $0x20] ss:$16 sps:$4 sm:$0xff]   ;;  %v2271_v33 = vld [vmem:[#allocation10 + $0x28] ss:$16 sps:$4 sm:$0xff]   ;;  %v2276_v34 = vld [vmem:[#allocation10 + $0x4] ss:$16 sps:$4 sm:$0xff]  }
  0x94   : > { %931 = vmatprep.subr.bf16.mxu0 %v2246_v14  ;;  %1004 = vmatprep.subr.bf16.mxu1 %v2249_v15  ;;  %v2279_v35 = vld [vmem:[#allocation10 + $0xc] ss:$16 sps:$4 sm:$0xff]   ;;  %v2274_v36 = vld [vmem:[#allocation10] ss:$16 sps:$4 sm:$0xff]   ;;  %v2277_v37 = vld [vmem:[#allocation10 + $0x8] ss:$16 sps:$4 sm:$0xff]  }
  0x95   : > { %v2280_v38 = vld [vmem:[#allocation11 + $0x78] sm:$0xff]   ;;  %v523_v41 = vsub.s32 0, %v2865_v40  ;;  %v531_v42 = vsub.s32 2, %v2865_v40  ;;  %v527_v44 = vsub.s32 1, %v2865_v40  ;;  %v535_v45 = vsub.s32 3, %v2865_v40  ;;  %v549_v58 = vld [vmem:[#allocation8] sm:$0xff] }
  0x96   : > { %v519_v43 = vld [vmem:[#allocation7] sm:$0xf]  ;;  %v2625_v46 = vmov 1983009808   ;;  %v2626_v55 = vmov 1966171168  }
  0x97   : > { %932 = vmatpush1.bf16.msra.mxu0 %v2244_v16  ;;  %1005 = vmatpush1.bf16.msra.mxu1 %v2247_v17  ;;  %v578_v47 = vunpack.c.l.s4 %v2625_v46  ;;  %v524_v48 = vrot.slane %v519_v43, %v523_v41  ;;  %v532_v49 = vrot.slane %v519_v43, %v531_v42  ;;  %v528_v50 = vrot.slane %v519_v43, %v527_v44  ;;  %v551_v60 = vld [vmem:[#allocation8 + $0x10] sm:$0xff]  ;;  %v550_v62 = vld [vmem:[#allocation8 + $0x8] sm:$0xff]  ;;  %v552_v1 = vld [vmem:[#allocation8 + $0x18] sm:$0xff]  ;;  %s1955_s19 = sshll.u32 %s2841_s1, 6  ;;  %s2034_s10 = sshll.u32 %s2698_s9, 9 }
  0x98   : > { %933 = vmatprep.subr.bf16.mxu0 %v2252_v18  ;;  %1006 = vmatprep.subr.bf16.mxu1 %v2255_v20  ;;  %v536_v51 = vrot.slane %v519_v43, %v535_v45  ;;  %v654_v56 = vunpack.c.l.s4 %v2626_v55  ;;  %s3123_s16 = scalar_lea.vmem [#allocation13], %s1955_s19  ;;  %s3147_s24 = scalar_lea.hbm %s3204_s8, %s2034_s10 }
  0x99   : > { %v579_v53 = vunpack.c.0.s8 %v578_v47  ;;  %s1816_s26 = sshll.u32 %s3123_s16, 4  ;;  %s1803_s9 = scalar_lea.sflag [#allocation4], %s2841_s1  ;;  %s3149_s26 = int_to_ptr.vmem [resolvable:$true] %s1816_s26 }
  0x9a   : > { %v655_v7 = vunpack.c.0.s8 %v654_v56  ;;  %s2534_s2 = scalar_lea.vmem %s3149_s26, 1024  ;;  %p3238_p7 = scmp.ne.s32.totalorder %s3223_s25, 0 }
  0x9b   : > { %934 = vmatpush1.bf16.msra.mxu0 %v2250_v19  ;;  %1007 = vmatpush1.bf16.msra.mxu1 %v2253_v21  ;;  %v2880_v4 = vsub.s32 %v579_v53, %v2865_v40  ;;  %v554_v19 = vld [vmem:[#allocation8 + $0x28] sm:$0xff]  ;;  %v556_v21 = vld [vmem:[#allocation8 + $0x38] sm:$0xff]  ;;  %p2535_p10 = scmp.ne.s32.totalorder %s3149_s26, %s2534_s2  ;;  %s2628_s20 = smov [#allocation13]  }
  0x9c   : > { %935 = vmatprep.subr.bf16.mxu0 %v2258_v22  ;;  %1008 = vmatprep.subr.bf16.mxu1 %v2261_v23  ;;  %v658_v22 = vsub.s32 %v655_v7, %v2865_v40  ;;  %v2281_v7 = vld [vmem:[#allocation11 + $0x38] sm:$0xff]   ;;  %s2538_s22 = sshll.u32 %s2628_s20, 4  ;;  %s2539_s22 = int_to_ptr.vmem [resolvable:$false] %s2538_s22 }
  0x9d   : > { %p2536_p1 = pnand %p2535_p10, %p3238_p7  ;;  %s2540_s11 = scalar_lea.vmem %s2539_s22, 2048 }
  0x9e   : > { %p2541_p4 = scmp.lt.s32.totalorder %s3149_s26, %s2539_s22  ;;  %p2542_p8 = scmp.lt.s32.totalorder %s2540_s11, %s2534_s2 }
  0x9f   : > { %936 = vmatpush1.bf16.msra.mxu0 %v2256_v24  ;;  %1009 = vmatpush1.bf16.msra.mxu1 %v2259_v25  ;;  %p2537_p9 = pneg %p2536_p1 }
  0xa0   : > { %937 = vmatprep.subr.bf16.mxu0 %v2264_v26  ;;  %1010 = vmatprep.subr.bf16.mxu1 %v2267_v27  ;;  %p2543_p6 = por %p2542_p8, %p2541_p4 }
  0xa2   : > { %p2544_p2 = pnand %p2543_p6, %p2537_p9 }
  0xa3   : > { %938 = vmatpush1.bf16.msra.mxu0 %v2262_v28  ;;  %1011 = vmatpush1.bf16.msra.mxu1 %v2265_v29  ;;  %v553_v29 = vld [vmem:[#allocation8 + $0x20] sm:$0xff] }
  0xa4   : > { %939 = vmatprep.subr.bf16.mxu0 %v2270_v30  ;;  %1012 = vmatprep.subr.bf16.mxu1 %v2273_v31  ;;  %v555_v30 = vld [vmem:[#allocation8 + $0x30] sm:$0xff] }
  0xa7   : > { %940 = vmatpush1.bf16.msra.mxu0 %v2268_v32  ;;  %1013 = vmatpush1.bf16.msra.mxu1 %v2271_v33 }
  0xa8   : > { %941 = vmatprep.subr.bf16.mxu0 %v2276_v34  ;;  %1014 = vmatprep.subr.bf16.mxu1 %v2279_v35 }
  0xab   : > { %942 = vmatpush1.bf16.msra.mxu0 %v2274_v36  ;;  %1015 = vmatpush1.bf16.msra.mxu1 %v2277_v37 }
  0xac   : > { %2035 = vmatprep.subr.bf16.mxu0 %v2280_v38 }
 0x14e   : > { %v467_v52 = vpop.f32.mrf.mxu0  ;;  %v510_v54 = vpop.f32.mrf.mxu1 }
 0x14f   : > { %v541_v57 = vmul.f32 %v524_v48, %v467_v52  ;;  %v543_v59 = vmul.f32 %v532_v49, %v510_v54 }
 0x150   : > { %v469_v61 = vpop.f32.mrf.mxu0  ;;  %v512_v63 = vpop.f32.mrf.mxu1 }
 0x151   : > { %v542_v2 = vmul.f32 %v528_v50, %v469_v61  ;;  %v544_v3 = vmul.f32 %v536_v51, %v512_v63  ;;  %v557_v8 = vadd.f32 %v549_v58, %v541_v57  ;;  %v559_v9 = vadd.f32 %v551_v60, %v543_v59 }
 0x152   : > { %v471_v5 = vpop.f32.mrf.mxu0  ;;  %v514_v6 = vpop.f32.mrf.mxu1 }
 0x153   : > { %v558_v10 = vadd.f32 %v550_v62, %v542_v2  ;;  %v560_v11 = vadd.f32 %v552_v1, %v544_v3  ;;  %v545_v25 = vmul.f32 %v524_v48, %v471_v5  ;;  %v547_v26 = vmul.f32 %v532_v49, %v514_v6  ;;  %v2282_v6 = vld [vmem:[#allocation11 + $0xf8] sm:$0xff]  }
 0x154   : > { %v473_v12 = vpop.f32.mrf.mxu0  ;;  %v516_v13 = vpop.f32.mrf.mxu1  ;;  %2075 = vmatprep.subr.bf16.mxu1 %v2282_v6 }
 0x155   : > { %v573_v14 = vcombine.low %v557_v8, %v558_v10  ;;  %v574_v15 = vcombine.high %v557_v8, %v558_v10  ;;  %v575_v16 = vcombine.low %v559_v9, %v560_v11  ;;  %v576_v17 = vcombine.high %v559_v9, %v560_v11  ;;  %v2283_v8 = vld [vmem:[#allocation11 + $0xb8] sm:$0xff]   ;;  %v2284_v9 = vld [vmem:[#allocation11 + $0x70] sm:$0xff]  }
 0x156   : > { %v546_v18 = vmul.f32 %v528_v50, %v473_v12  ;;  %v548_v20 = vmul.f32 %v536_v51, %v516_v13  ;;  %v561_v35 = vadd.f32 %v553_v29, %v545_v25  ;;  %v563_v36 = vadd.f32 %v555_v30, %v547_v26  ;;  %v2286_v10 = vld [vmem:[#allocation11 + $0xf0] sm:$0xff]   ;;  %v2290_v13 = vld [vmem:[#allocation11 + $0xe8] sm:$0xff]  }
 0x157   : > { %v583_v23 = vrot.slane %v573_v14, %v2880_v4  ;;  %v597_v24 = vrot.slane %v575_v16, %v2880_v4  ;;  %v590_v27 = vrot.slane %v574_v15, %v2880_v4  ;;  %v604_v28 = vrot.slane %v576_v17, %v2880_v4  ;;  %v2285_v11 = vld [vmem:[#allocation11 + $0x30] sm:$0xff]   ;;  %v2289_v14 = vld [vmem:[#allocation11 + $0x28] sm:$0xff]   ;;  %v2292_v16 = vld [vmem:[#allocation11 + $0x60] sm:$0xff]  }
 0x158   : > { %v562_v33 = vadd.f32 %v554_v19, %v546_v18  ;;  %v564_v34 = vadd.f32 %v556_v21, %v548_v20  ;;  %v2287_v12 = vld [vmem:[#allocation11 + $0xb0] sm:$0xff]   ;;  %v2291_v15 = vld [vmem:[#allocation11 + $0xa8] sm:$0xff]   ;;  %v2294_v17 = vld [vmem:[#allocation11 + $0xe0] sm:$0xff]  }
 0x159   : > { %v605_v31 = vcombine.low %v583_v23, %v597_v24  ;;  %v606_v32 = vcombine.high %v583_v23, %v597_v24  ;;  %v607_v39 = vcombine.low %v590_v27, %v604_v28  ;;  %v608_v48 = vcombine.high %v590_v27, %v604_v28  ;;  %v2293_v18 = vld [vmem:[#allocation11 + $0x20] sm:$0xff]   ;;  %v2296_v20 = vld [vmem:[#allocation11 + $0x58] sm:$0xff]   ;;  %v2300_v24 = vld [vmem:[#allocation11 + $0x50] sm:$0xff]  }
 0x15a   : > { %v609_v43 = vcombine.low %v561_v35, %v562_v33  ;;  %v611_v46 = vcombine.low %v563_v36, %v564_v34  ;;  %v610_v53 = vcombine.high %v561_v35, %v562_v33  ;;  %v612_v54 = vcombine.high %v563_v36, %v564_v34  ;;  %v2295_v19 = vld [vmem:[#allocation11 + $0xa0] sm:$0xff]   ;;  %v2298_v21 = vld [vmem:[#allocation11 + $0xd8] sm:$0xff]   ;;  %v2302_v25 = vld [vmem:[#allocation11 + $0xd0] sm:$0xff]  }
 0x15b   : > { %v2887_v37 = vrot.slane %v605_v31, %v658_v22  ;;  %v2889_v38 = vrot.slane %v606_v32, %v658_v22  ;;  %v2897_v51 = vrot.slane %v607_v39, %v658_v22  ;;  %v2899_v52 = vrot.slane %v608_v48, %v658_v22  ;;  %v2299_v23 = vld [vmem:[#allocation11 + $0x98] sm:$0xff]   ;;  %v2301_v26 = vld [vmem:[#allocation11 + $0x10] sm:$0xff]   ;;  %v2304_v28 = vld [vmem:[#allocation11 + $0x48] sm:$0xff]  }
 0x15c   : > { %v619_v49 = vrot.slane %v609_v43, %v2880_v4  ;;  %v633_v50 = vrot.slane %v611_v46, %v2880_v4  ;;  %v626_v58 = vrot.slane %v610_v53, %v2880_v4  ;;  %v640_v59 = vrot.slane %v612_v54, %v2880_v4  ;;  %v2303_v27 = vld [vmem:[#allocation11 + $0x90] sm:$0xff]   ;;  %v2306_v29 = vld [vmem:[#allocation11 + $0xc8] sm:$0xff]   ;;  %v2308_v32 = vld [vmem:[#allocation11 + $0x40] sm:$0xff]  }
 0x15d   : > { %v709_v47 = vpack.c.bf16 %v2889_v38, %v2887_v37  ;;  %v710_v55 = vpack.c.bf16 %v2899_v52, %v2897_v51  ;;  %v2305_v30 = vld [vmem:[#allocation11 + $0x8] sm:$0xff]   ;;  %v2310_v33 = vld [vmem:[#allocation11 + $0xc0] sm:$0xff]   ;;  %v745_v36 = vld [vmem:[%s3201_s5] sm:$0xf] }
 0x15e   : > { %v641_v56 = vcombine.low %v619_v49, %v633_v50  ;;  %v642_v57 = vcombine.high %v619_v49, %v633_v50  ;;  %v643_v63 = vcombine.low %v626_v58, %v640_v59  ;;  %v644_v1 = vcombine.high %v626_v58, %v640_v59  ;;  %v2307_v31 = vld [vmem:[#allocation11 + $0x88] sm:$0xff]   ;;  %v2309_v34 = vld [vmem:[#allocation11] sm:$0xff]  }
 0x15f   : > { %960 = vmatmul.mubr.bf16.vlgmr.msra.gmra.mxu0 %v709_v47  ;;  %1033 = vmatmul.mubr.bf16.vlgmr.msra.gmra.mxu1 %v709_v47  ;;  %v2311_v35 = vld [vmem:[#allocation11 + $0x80] sm:$0xff]   ;;  %v2926_v39 = vrot.slane %v745_v36, %v523_v41  ;;  %v2930_v47 = vrot.slane %v745_v36, %v531_v42  ;;  %v2934_v48 = vrot.slane %v745_v36, %v527_v44 }
 0x160   : > { %969 = vmatprep.mubr.bf16.mxu0 %v2624_v0  ;;  %1042 = vmatprep.mubr.bf16.mxu1 %v2624_v0  ;;  %v2907_v60 = vrot.slane %v641_v56, %v658_v22  ;;  %v2909_v61 = vrot.slane %v642_v57, %v658_v22  ;;  %v2915_v2 = vrot.slane %v643_v63, %v658_v22 }
 0x161   : > { %v2917_v3 = vrot.slane %v644_v1, %v658_v22  ;;  %2036 = vmatpush3.bf16.msra.mxu0 %v2281_v7  ;;  %2076 = vmatpush3.bf16.msra.mxu1 %v2283_v8  ;;  %v2297_v22 = vld [vmem:[#allocation11 + $0x18] sm:$0xff]   ;;  %v2938_v53 = vrot.slane %v745_v36, %v535_v45 }
 0x162   : > { %v711_v62 = vpack.c.bf16 %v2909_v61, %v2907_v60  ;;  %2037 = vmatprep.subr.bf16.mxu0 %v2284_v9  ;;  %2077 = vmatprep.subr.bf16.mxu1 %v2286_v10 }
 0x163   : > { %3236 = vst [vmem:[#allocation19_spill] sm:$0xff] %v2917_v3  ;;  %v712_v5 = vpack.c.bf16 %v2917_v3, %v2915_v2 }
 0x165   : > { %2038 = vmatpush3.bf16.msra.mxu0 %v2285_v11  ;;  %2078 = vmatpush3.bf16.msra.mxu1 %v2287_v12 }
 0x166   : > { %2079 = vmatprep.subr.bf16.mxu1 %v2290_v13 }
 0x167   : > { %970 = vmatmul.mubr.bf16.gmra.mxu0 %v710_v55  ;;  %1043 = vmatmul.mubr.bf16.gmra.mxu1 %v710_v55 }
 0x168   : > { %979 = vmatprep.mubr.bf16.mxu0 %v2624_v0  ;;  %1052 = vmatprep.mubr.bf16.mxu1 %v2624_v0 }
 0x169   : > { %2080 = vmatpush3.bf16.msra.mxu1 %v2291_v15 }
 0x16a   : > { %2081 = vmatprep.subr.bf16.mxu1 %v2294_v17 }
 0x16d   : > { %2082 = vmatpush3.bf16.msra.mxu1 %v2295_v19 }
 0x16e   : > { %2083 = vmatprep.subr.bf16.mxu1 %v2298_v21 }
 0x16f   : > { %980 = vmatmul.mubr.bf16.gmra.mxu0 %v711_v62  ;;  %1053 = vmatmul.mubr.bf16.gmra.mxu1 %v711_v62 }
 0x170   : > { %989 = vmatprep.mubr.bf16.mxu0 %v2624_v0  ;;  %1062 = vmatprep.mubr.bf16.mxu1 %v2624_v0  ;;  %v2288_v0 = vld [vmem:[#allocation11 + $0x68] sm:$0xff]  }
 0x171   : > { %2039 = vmatprep.subr.bf16.mxu0 %v2288_v0  ;;  %2084 = vmatpush3.bf16.msra.mxu1 %v2299_v23 }
 0x172   : > { %2040 = vmatpush3.bf16.msra.mxu0 %v2289_v14  ;;  %2085 = vmatprep.subr.bf16.mxu1 %v2302_v25 }
 0x173   : > { %2041 = vmatprep.subr.bf16.mxu0 %v2292_v16 }
 0x175   : > { %2086 = vmatpush3.bf16.msra.mxu1 %v2303_v27 }
 0x176   : > { %2042 = vmatpush3.bf16.msra.mxu0 %v2293_v18  ;;  %2087 = vmatprep.subr.bf16.mxu1 %v2306_v29 }
 0x177   : > { %990 = vmatmul.mubr.bf16.gmra.mxu0 %v712_v5  ;;  %1063 = vmatmul.mubr.bf16.gmra.mxu1 %v712_v5 }
 0x178   : > { %2043 = vmatprep.subr.bf16.mxu0 %v2296_v20 }
 0x179   : > { %2088 = vmatpush3.bf16.msra.mxu1 %v2307_v31 }
 0x17a   : > { %2044 = vmatpush3.bf16.msra.mxu0 %v2297_v22  ;;  %2089 = vmatprep.subr.bf16.mxu1 %v2310_v33 }
 0x17b   : > { %2045 = vmatprep.subr.bf16.mxu0 %v2300_v24 }
 0x17d   : > { %2090 = vmatpush3.bf16.msra.mxu1 %v2311_v35 }
 0x17e   : > { %2046 = vmatpush3.bf16.msra.mxu0 %v2301_v26 }
 0x17f   : > { %2047 = vmatprep.subr.bf16.mxu0 %v2304_v28 }
 0x182   : > { %2048 = vmatpush3.bf16.msra.mxu0 %v2305_v30 }
 0x183   : > { %2049 = vmatprep.subr.bf16.mxu0 %v2308_v32 }
 0x186   : > { %2050 = vmatpush3.bf16.msra.mxu0 %v2309_v34 }
 0x21f   : > { %v961_v43 = vpop.f32.mrf.mxu0  ;;  %v1034_v46 = vpop.f32.mrf.mxu1 }
 0x220   : > { %v962_v54 = vadd.f32 %v961_v43, %v2926_v39  ;;  %v1035_v56 = vadd.f32 %v1034_v46, %v2930_v47 }
 0x221   : > { %v963_v49 = vpop.f32.mrf.mxu0  ;;  %v1036_v50 = vpop.f32.mrf.mxu1 }
 0x222   : > { %v964_v57 = vadd.f32 %v963_v49, %v2934_v48  ;;  %v1105_v44 = vmul.f32 0.70710677, %v962_v54  ;;  %v1037_v62 = vadd.f32 %v1036_v50, %v2938_v53  ;;  %v1107_v5 = vmul.f32 0.70710677, %v1035_v56 }
 0x223   : > { %v965_v41 = vpop.f32.mrf.mxu0  ;;  %v1038_v55 = vpop.f32.mrf.mxu1  ;;  %v2960_v35 = vmul.f32 0.5, %v962_v54  ;;  %v2963_v43 = vmul.f32 0.5, %v1035_v56 }
 0x224   : > { %v966_v59 = vadd.f32 %v965_v41, %v2926_v39  ;;  %v1039_v45 = vadd.f32 %v1038_v55, %v2930_v47  ;;  %v1106_v6 = vmul.f32 0.70710677, %v964_v57  ;;  %2312 = verf.f32 %v1105_v44 }
 0x225   : > { %v967_v42 = vpop.f32.mrf.mxu0  ;;  %v1040_v58 = vpop.f32.mrf.mxu1  ;;  %v1108_v11 = vmul.f32 0.70710677, %v1037_v62  ;;  %2314 = verf.f32 %v1107_v5  ;;  %v2965_v46 = vmul.f32 0.5, %v964_v57  ;;  %v2967_v55 = vmul.f32 0.5, %v1037_v62 }
 0x226   : > { %v1109_v9 = vmul.f32 0.70710677, %v966_v59  ;;  %v968_v10 = vadd.f32 %v967_v42, %v2934_v48  ;;  %v1041_v12 = vadd.f32 %v1040_v58, %v2938_v53  ;;  %v1111_v14 = vmul.f32 0.70710677, %v1039_v45 }
 0x227   : > { %v971_v63 = vpop.f32.mrf.mxu0  ;;  %v1044_v1 = vpop.f32.mrf.mxu1  ;;  %2316 = verf.f32 %v1106_v6  ;;  %v1077_v54 = vmul.f32 0.5, %v966_v59 }
 0x228   : > { %2318 = verf.f32 %v1109_v9  ;;  %v1110_v17 = vmul.f32 0.70710677, %v968_v10  ;;  %v1112_v19 = vmul.f32 0.70710677, %v1041_v12  ;;  %v972_v25 = vadd.f32 %v971_v63, %v2926_v39 }
 0x229   : > { %v973_v7 = vpop.f32.mrf.mxu0  ;;  %v1046_v8 = vpop.f32.mrf.mxu1  ;;  %2320 = verf.f32 %v1108_v11  ;;  %v2956_v28 = vadd.f32 %v1044_v1, %v2930_v47  ;;  %v2976_v63 = vmul.f32 0.5, %v1039_v45  ;;  %v2978_v1 = vmul.f32 0.5, %v968_v10 }
 0x22a   : > { %v974_v18 = vadd.f32 %v973_v7, %v2934_v48  ;;  %v1047_v20 = vadd.f32 %v1046_v8, %v2938_v53  ;;  %2322 = verf.f32 %v1111_v14  ;;  %v1113_v49 = vmul.f32 0.70710677, %v972_v25 }
 0x22b   : > { %v975_v0 = vpop.f32.mrf.mxu0  ;;  %v1048_v13 = vpop.f32.mrf.mxu1  ;;  %2324 = verf.f32 %v1110_v17  ;;  %v1115_v42 = vmul.f32 0.70710677, %v2956_v28  ;;  %v2983_v7 = vmul.f32 0.5, %v1041_v12  ;;  %v2985_v8 = vmul.f32 0.5, %v972_v25 }
 0x22c   : > { %v1114_v29 = vmul.f32 0.70710677, %v974_v18  ;;  %2326 = verf.f32 %v1112_v19  ;;  %v1116_v31 = vmul.f32 0.70710677, %v1047_v20  ;;  %v976_v32 = vadd.f32 %v975_v0, %v2926_v39 }
 0x22d   : > { %v977_v15 = vpop.f32.mrf.mxu0  ;;  %v1050_v16 = vpop.f32.mrf.mxu1  ;;  %v1049_v36 = vadd.f32 %v1048_v13, %v2930_v47  ;;  %v2990_v45 = vmul.f32 0.5, %v974_v18  ;;  %v2992_v10 = vmul.f32 0.5, %v1047_v20 }
 0x22e   : > { %v978_v23 = vadd.f32 %v977_v15, %v2934_v48  ;;  %v2952_v24 = vadd.f32 %v1050_v16, %v2938_v53  ;;  %v1117_v44 = vmul.f32 0.70710677, %v976_v32  ;;  %v2995_v15 = vmul.f32 0.5, %v976_v32 }
 0x22f   : > { %v981_v21 = vpop.f32.mrf.mxu0  ;;  %v1054_v22 = vpop.f32.mrf.mxu1  ;;  %v1119_v5 = vmul.f32 0.70710677, %v1049_v36  ;;  %v2997_v12 = vmul.f32 0.5, %v1049_v36 }
 0x230   : > { %v1118_v30 = vmul.f32 0.70710677, %v978_v23  ;;  %v1120_v33 = vmul.f32 0.70710677, %v2952_v24  ;;  %v2981_v62 = vadd.f32 %v981_v21, %v2926_v39  ;;  %v2988_v59 = vadd.f32 %v1054_v22, %v2930_v47 }
 0x231   : > { %v983_v26 = vpop.f32.mrf.mxu0  ;;  %v1056_v27 = vpop.f32.mrf.mxu1  ;;  %v3004_v22 = vmul.f32 0.5, %v978_v23 }
 0x232   : > { %2328 = verf.f32 %v1118_v30  ;;  %v2971_v58 = vadd.f32 %v983_v26, %v2934_v48  ;;  %v2974_v56 = vadd.f32 %v1056_v27, %v2938_v53  ;;  %v2313_v57 = vpop.eup %2312  ;;  %v1121_v21 = vmul.f32 0.70710677, %v2981_v62 }
 0x233   : > { %v985_v34 = vpop.f32.mrf.mxu0  ;;  %2330 = verf.f32 %v1120_v33  ;;  %v1058_v50 = vpop.f32.mrf.mxu1  ;;  %v1169_v19 = vadd.f32 1.0, %v2313_v57  ;;  %v1123_v25 = vmul.f32 0.70710677, %v2988_v59 }
 0x234   : > { %2332 = verf.f32 %v1114_v29  ;;  %v2315_v6 = vpop.eup %2314  ;;  %v1122_v13 = vmul.f32 0.70710677, %v2971_v58  ;;  %v1124_v16 = vmul.f32 0.70710677, %v2974_v56  ;;  %v3002_v18 = vadd.f32 %v985_v34, %v2926_v39 }
 0x235   : > { %v987_v41 = vpop.f32.mrf.mxu0  ;;  %2334 = verf.f32 %v1116_v31  ;;  %v1060_v9 = vpop.f32.mrf.mxu1  ;;  %v3008_v26 = vadd.f32 %v1058_v50, %v2930_v47  ;;  %v1171_v31 = vadd.f32 1.0, %v2315_v6 }
 0x236   : > { %2336 = verf.f32 %v1113_v49  ;;  %v2317_v0 = vpop.eup %2316  ;;  %v3011_v27 = vadd.f32 %v987_v41, %v2934_v48  ;;  %v3014_v33 = vadd.f32 %v1060_v9, %v2938_v53  ;;  %v1088_v49 = vmul.f32 0.5, %v2952_v24 }
 0x237   : > { %v991_v11 = vpop.f32.mrf.mxu0  ;;  %2338 = verf.f32 %v1115_v42  ;;  %v2319_v14 = vpop.eup %2318  ;;  %v1170_v36 = vadd.f32 1.0, %v2317_v0  ;;  %v1125_v41 = vmul.f32 0.70710677, %v3002_v18  ;;  %v1127_v6 = vmul.f32 0.70710677, %v3008_v26 }
 0x238   : > { %2340 = verf.f32 %v1117_v44  ;;  %v2321_v17 = vpop.eup %2320  ;;  %v1064_v29 = vpop.f32.mrf.mxu1  ;;  %v1173_v32 = vadd.f32 1.0, %v2319_v14  ;;  %v1126_v44 = vmul.f32 0.70710677, %v3011_v27  ;;  %v1128_v9 = vmul.f32 0.70710677, %v3014_v33 }
 0x239   : > { %2342 = verf.f32 %v1119_v5  ;;  %v2323_v20 = vpop.eup %2322  ;;  %v993_v30 = vpop.f32.mrf.mxu0  ;;  %v1172_v23 = vadd.f32 1.0, %v2321_v17  ;;  %v3020_v5 = vmul.f32 %v1169_v19, %v2960_v35  ;;  %v3027_v17 = vadd.f32 %v991_v11, %v2926_v39 }
 0x23a   : > { %2344 = verf.f32 %v1122_v13  ;;  %v2325_v34 = vpop.eup %2324  ;;  %v1175_v50 = vadd.f32 1.0, %v2323_v20  ;;  %v1066_v0 = vpop.f32.mrf.mxu1  ;;  %v3024_v14 = vmul.f32 %v1173_v32, %v1077_v54  ;;  %v3030_v20 = vmul.f32 %v1171_v31, %v2963_v43 }
 0x23b   : > { %2346 = verf.f32 %v1124_v16  ;;  %v2327_v42 = vpop.eup %2326  ;;  %v995_v13 = vpop.f32.mrf.mxu0  ;;  %v1174_v16 = vadd.f32 1.0, %v2325_v34  ;;  %v1202_v35 = vmul.f32 %v1170_v36, %v2965_v46  ;;  %v3034_v19 = vadd.f32 %v993_v30, %v2934_v48 }
 0x23c   : > { %2348 = verf.f32 %v1121_v21  ;;  %v1204_v3 = vmul.f32 %v1172_v23, %v2967_v55  ;;  %v3038_v54 = vmul.f32 %v1175_v50, %v2976_v63  ;;  %v1176_v32 = vadd.f32 1.0, %v2327_v42  ;;  %v1068_v31 = vpop.f32.mrf.mxu1 }
 0x23d   : > { %2350 = verf.f32 %v1123_v25  ;;  %v1129_v43 = vmul.f32 0.70710677, %v3027_v17  ;;  %v1233_v30 = vpack.c.bf16 %v3024_v14, %v3020_v5  ;;  %v1206_v36 = vmul.f32 %v1174_v16, %v2978_v1 }
 0x23e   : > { %2352 = verf.f32 %v1126_v44  ;;  %v997_v44 = vpop.f32.mrf.mxu0  ;;  %v1130_v55 = vmul.f32 0.70710677, %v3034_v19  ;;  %v3046_v42 = vadd.f32 %v1064_v29, %v2930_v47  ;;  %v3049_v50 = vadd.f32 %v1066_v0, %v2938_v53 }
 0x23f   : > { %v2329_v57 = vpop.eup %2328  ;;  %2354 = verf.f32 %v1128_v9  ;;  %v1235_v5 = vpack.c.bf16 %v3038_v54, %v3030_v20  ;;  %v1208_v1 = vmul.f32 %v1176_v32, %v2983_v7 }
 0x240   : > { %v2331_v24 = vpop.eup %2330  ;;  %2356 = verf.f32 %v1125_v41  ;;  %v1182_v11 = vadd.f32 1.0, %v2329_v57  ;;  %v3052_v41 = vadd.f32 %v995_v13, %v2926_v39  ;;  %v1132_v39 = vmul.f32 0.70710677, %v3049_v50  ;;  %v1070_v13 = vpop.f32.mrf.mxu1 }
 0x241   : > { %v2333_v21 = vpop.eup %2332  ;;  %v1184_v34 = vadd.f32 1.0, %v2331_v24  ;;  %2358 = verf.f32 %v1127_v6  ;;  %v3058_v6 = vadd.f32 %v1068_v31, %v2930_v47  ;;  %v3061_v24 = vadd.f32 %v997_v44, %v2934_v48 }
 0x242   : > { %v2335_v25 = vpop.eup %2334  ;;  %v1178_v9 = vadd.f32 1.0, %v2333_v21  ;;  %v1214_v14 = vmul.f32 %v1182_v11, %v3004_v22  ;;  %2360 = verf.f32 %v1129_v43  ;;  %v1133_v21 = vmul.f32 0.70710677, %v3052_v41 }
 0x243   : > { %v2337_v46 = vpop.eup %2336  ;;  %v1180_v23 = vadd.f32 1.0, %v2335_v25  ;;  %v1216_v0 = vmul.f32 %v1184_v34, %v1088_v49  ;;  %2362 = verf.f32 %v1130_v55  ;;  %v1135_v7 = vmul.f32 0.70710677, %v3058_v6 }
 0x244   : > { %v2339_v63 = vpop.eup %2338  ;;  %v1210_v16 = vmul.f32 %v1178_v9, %v2990_v45  ;;  %v1131_v48 = vmul.f32 0.70710677, %v3046_v42  ;;  %2364 = verf.f32 %v1132_v39  ;;  %v1134_v22 = vmul.f32 0.70710677, %v3061_v24 }
 0x245   : > { %v2341_v57 = vpop.eup %2340  ;;  %v1212_v20 = vmul.f32 %v1180_v23, %v2992_v10  ;;  %2366 = verf.f32 %v1133_v21  ;;  %v3072_v54 = vadd.f32 %v1070_v13, %v2938_v53  ;;  %v1234_v45 = vpack.c.bf16 %v1206_v36, %v1202_v35 }
 0x246   : > { %v2343_v29 = vpop.eup %2342  ;;  %v1181_v25 = vadd.f32 1.0, %v2341_v57  ;;  %2368 = verf.f32 %v1135_v7  ;;  %v1236_v11 = vpack.c.bf16 %v1208_v1, %v1204_v3  ;;  %v1238_v34 = vpack.c.bf16 %v1214_v14, %v1210_v16 }
 0x247   : > { %v2345_v47 = vpop.eup %2344  ;;  %v1240_v43 = vpack.c.bf16 %v1216_v0, %v1212_v20  ;;  %v1183_v44 = vadd.f32 1.0, %v2343_v29  ;;  %2370 = verf.f32 %v1134_v22  ;;  %v1136_v9 = vmul.f32 0.70710677, %v3072_v54  ;;  %1544 = vmatprep.mubr.bf16.mxu0 %v1234_v45 }
 0x248   : > { %v2347_v49 = vpop.eup %2346  ;;  %v1186_v10 = vadd.f32 1.0, %v2345_v47  ;;  %v1177_v23 = vadd.f32 1.0, %v2337_v46  ;;  %v1090_v57 = vmul.f32 0.5, %v2971_v58  ;;  %2372 = verf.f32 %v1131_v48  ;;  %1609 = vmatprep.mubr.bf16.mxu1 %v1236_v11  ;;  %1545 = vmatmul.mubr.bf16.vlgmr.msra.gmra.mxu0 %v1233_v30 }
 0x249   : > { %v2349_v32 = vpop.eup %2348  ;;  %v1188_v39 = vadd.f32 1.0, %v2347_v49  ;;  %v1179_v35 = vadd.f32 1.0, %v2339_v63  ;;  %v1094_v3 = vmul.f32 0.5, %v3011_v27  ;;  %2374 = verf.f32 %v1136_v9  ;;  %1610 = vmatmul.mubr.bf16.vlgmr.msra.gmra.mxu1 %v1235_v5  ;;  %1552 = vmatprep.mubr.bf16.mxu0 %v1238_v34 }
 0x24a   : > { %v2351_v31 = vpop.eup %2350  ;;  %v1213_v29 = vmul.f32 %v1181_v25, %v2995_v15  ;;  %v1092_v14 = vmul.f32 0.5, %v2974_v56  ;;  %v1096_v46 = vmul.f32 0.5, %v3014_v33  ;;  %1617 = vmatprep.mubr.bf16.mxu1 %v1240_v43  ;;  %v1083_v30 = vmul.f32 0.5, %v2956_v28 }
 0x24b   : > { %v2353_v55 = vpop.eup %2352  ;;  %v1215_v63 = vmul.f32 %v1183_v44, %v2997_v12  ;;  %v1218_v13 = vmul.f32 %v1186_v10, %v1090_v57  ;;  %v1209_v16 = vmul.f32 %v1177_v23, %v2985_v8  ;;  %v1185_v25 = vadd.f32 1.0, %v2349_v32 }
 0x24c   : > { %v2355_v53 = vpop.eup %2354  ;;  %v1190_v36 = vadd.f32 1.0, %v2353_v55  ;;  %v1220_v5 = vmul.f32 %v1188_v39, %v1092_v14  ;;  %v1211_v7 = vmul.f32 %v1179_v35, %v1083_v30  ;;  %v1187_v45 = vadd.f32 1.0, %v2351_v31 }
 0x24d   : > { %v2357_v1 = vpop.eup %2356  ;;  %v1192_v58 = vadd.f32 1.0, %v2355_v53  ;;  %v1237_v56 = vpack.c.bf16 %v1213_v29, %v1209_v16  ;;  %v1093_v28 = vmul.f32 0.5, %v3002_v18  ;;  %v1095_v12 = vmul.f32 0.5, %v3008_v26 }
 0x24e   : > { %v2359_v0 = vpop.eup %2358  ;;  %v1222_v27 = vmul.f32 %v1190_v36, %v1094_v3  ;;  %v1189_v15 = vadd.f32 1.0, %v2357_v1  ;;  %v1239_v22 = vpack.c.bf16 %v1215_v63, %v1211_v7  ;;  %v1089_v34 = vmul.f32 0.5, %v2981_v62 }
 0x24f   : > { %v1224_v21 = vmul.f32 %v1192_v58, %v1096_v46  ;;  %v1191_v20 = vadd.f32 1.0, %v2359_v0  ;;  %v2361_v33 = vpop.eup %2360  ;;  %v1091_v43 = vmul.f32 0.5, %v2988_v59  ;;  %v1098_v18 = vmul.f32 0.5, %v3034_v19 }
 0x250   : > { %v1242_v47 = vpack.c.bf16 %v1222_v27, %v1218_v13  ;;  %v2363_v49 = vpop.eup %2362  ;;  %1553 = vmatmul.mubr.bf16.gmra.mxu0 %v1237_v56  ;;  %v1221_v44 = vmul.f32 %v1189_v15, %v1093_v28  ;;  %v1217_v31 = vmul.f32 %v1185_v25, %v1089_v34  ;;  %v1100_v57 = vmul.f32 0.5, %v3049_v50 }
 0x251   : > { %v1244_v48 = vpack.c.bf16 %v1224_v21, %v1220_v5  ;;  %v2365_v11 = vpop.eup %2364  ;;  %1618 = vmatmul.mubr.bf16.gmra.mxu1 %v1239_v22  ;;  %v1223_v10 = vmul.f32 %v1191_v20, %v1095_v12  ;;  %v1194_v55 = vadd.f32 1.0, %v2363_v49  ;;  %v1219_v23 = vmul.f32 %v1187_v45, %v1091_v43 }
 0x252   : > { %1560 = vmatprep.mubr.bf16.mxu0 %v1242_v47  ;;  %v2367_v8 = vpop.eup %2366  ;;  %v1196_v39 = vadd.f32 1.0, %v2365_v11  ;;  %v1102_v53 = vmul.f32 0.5, %v3061_v24  ;;  %v1104_v59 = vmul.f32 0.5, %v3072_v54  ;;  %v1241_v36 = vpack.c.bf16 %v1221_v44, %v1217_v31 }
 0x253   : > { %1625 = vmatprep.mubr.bf16.mxu1 %v1244_v48  ;;  %v2369_v9 = vpop.eup %2368  ;;  %v1197_v3 = vadd.f32 1.0, %v2367_v8  ;;  %v1243_v1 = vpack.c.bf16 %v1223_v10, %v1219_v23  ;;  %v1226_v29 = vmul.f32 %v1194_v55, %v1098_v18  ;;  %v1193_v0 = vadd.f32 1.0, %v2361_v33 }
 0x254   : > { %v2371_v32 = vpop.eup %2370  ;;  %v1199_v14 = vadd.f32 1.0, %v2369_v9  ;;  %v1101_v19 = vmul.f32 0.5, %v3052_v41  ;;  %v1103_v30 = vmul.f32 0.5, %v3058_v6  ;;  %v1228_v63 = vmul.f32 %v1196_v39, %v1100_v57 }
 0x255   : > { %v2373_v26 = vpop.eup %2372  ;;  %v1198_v35 = vadd.f32 1.0, %v2371_v32  ;;  %v1097_v27 = vmul.f32 0.5, %v3027_v17  ;;  %v1099_v16 = vmul.f32 0.5, %v3046_v42  ;;  %v3098_v17 = vld [vmem:[%s3203_s7] ss:$0 sm:$0xff] }
 0x256   : > { %v2375_v62 = vpop.eup %2374  ;;  %v1195_v50 = vadd.f32 1.0, %v2373_v26  ;;  %v1229_v54 = vmul.f32 %v1197_v3, %v1101_v19  ;;  %v1231_v5 = vmul.f32 %v1199_v14, %v1103_v30  ;;  %v2627_v12 = vmov 1935823168  }
 0x257   : > { %v1230_v46 = vmul.f32 %v1198_v35, %v1102_v53  ;;  %v1200_v58 = vadd.f32 1.0, %v2375_v62  ;;  %v1225_v7 = vmul.f32 %v1193_v0, %v1097_v27  ;;  %v1651_v11 = vunpack.c.l.s4 %v2627_v12 }
 0x258   : > { %1561 = vmatmul.mubr.bf16.gmra.mxu0 %v1241_v36  ;;  %v1227_v47 = vmul.f32 %v1195_v50, %v1099_v16 }
 0x259   : > { %v1232_v24 = vmul.f32 %v1200_v58, %v1104_v59  ;;  %1626 = vmatmul.mubr.bf16.gmra.mxu1 %v1243_v1  ;;  %v1246_v13 = vpack.c.bf16 %v1230_v46, %v1226_v29  ;;  %v1245_v41 = vpack.c.bf16 %v1229_v54, %v1225_v7  ;;  %v1652_v18 = vunpack.c.0.s8 %v1651_v11 }
 0x25a   : > { %v1247_v15 = vpack.c.bf16 %v1231_v5, %v1227_v47 }
 0x25b   : > { %1568 = vmatprep.mubr.bf16.mxu0 %v1246_v13  ;;  %v1248_v21 = vpack.c.bf16 %v1232_v24, %v1228_v63  ;;  %v3106_v29 = vsub.s32 %v1652_v18, %v2865_v40 }
 0x25d   : > { %1633 = vmatprep.mubr.bf16.mxu1 %v1248_v21 }
 0x260   : > { %1569 = vmatmul.mubr.bf16.gmra.mxu0 %v1245_v41 }
 0x261   : > { %1634 = vmatmul.mubr.bf16.gmra.mxu1 %v1247_v15 }
 0x308   : > { %v2051_v6 = vpop.f32.mrf.mxu0 }
 0x309   : > { %v2091_v20 = vpop.f32.mrf.mxu1 }
 0x30a   : > { %v2052_v56 = vpop.f32.mrf.mxu0 }
 0x30b   : > { %v2092_v48 = vpop.f32.mrf.mxu1  ;;  %v2053_v33 = vadd.f32 %v2052_v56, %v2051_v6 }
 0x30c   : > { %v2054_v22 = vpop.f32.mrf.mxu0  ;;  %v2093_v10 = vadd.f32 %v2092_v48, %v2091_v20 }
 0x30d   : > { %v2094_v42 = vpop.f32.mrf.mxu1  ;;  %v1547_v28 = vadd.f32 %v2053_v33, %v3098_v17 }
 0x30e   : > { %v2055_v49 = vpop.f32.mrf.mxu0 }
 0x30f   : > { %v2056_v25 = vadd.f32 %v2055_v49, %v2054_v22  ;;  %v2095_v45 = vpop.f32.mrf.mxu1  ;;  %v1612_v23 = vadd.f32 %v2093_v10, %v1547_v28 }
 0x310   : > { %v2057_v8 = vpop.f32.mrf.mxu0  ;;  %v2096_v43 = vadd.f32 %v2095_v45, %v2094_v42 }
 0x311   : > { %v1550_v34 = vadd.f32 %v2056_v25, %v3098_v17  ;;  %v2097_v44 = vpop.f32.mrf.mxu1  ;;  %v1642_v1 = vadd.f32 %v1612_v23, %v2887_v37 }
 0x312   : > { %v2058_v9 = vpop.f32.mrf.mxu0 }
 0x313   : > { %v1615_v55 = vadd.f32 %v2096_v43, %v1550_v34  ;;  %v2059_v32 = vadd.f32 %v2058_v9, %v2057_v8  ;;  %v2098_v31 = vpop.f32.mrf.mxu1  ;;  %v1656_v24 = vrot.slane %v1642_v1, %v3106_v29 }
 0x314   : > { %v2060_v26 = vpop.f32.mrf.mxu0  ;;  %v2099_v39 = vadd.f32 %v2098_v31, %v2097_v44 }
 0x315   : > { %v1555_v57 = vadd.f32 %v2059_v32, %v3098_v17  ;;  %v2100_v53 = vpop.f32.mrf.mxu1  ;;  %v1643_v35 = vadd.f32 %v1615_v55, %v2889_v38 }
 0x316   : > { %v2061_v62 = vpop.f32.mrf.mxu0 }
 0x317   : > { %v1620_v3 = vadd.f32 %v2099_v39, %v1555_v57  ;;  %v2062_v59 = vadd.f32 %v2061_v62, %v2060_v26  ;;  %v2101_v36 = vpop.f32.mrf.mxu1  ;;  %v1663_v19 = vrot.slane %v1643_v35, %v3106_v29 }
 0x318   : > { %v2063_v14 = vpop.f32.mrf.mxu0  ;;  %v2102_v58 = vadd.f32 %v2101_v36, %v2100_v53 }
 0x319   : > { %v1558_v46 = vadd.f32 %v2062_v59, %v3098_v17  ;;  %v2103_v0 = vpop.f32.mrf.mxu1  ;;  %v1644_v50 = vadd.f32 %v1620_v3, %v2897_v51  ;;  %v1714_v54 = vcombine.low %v1656_v24, %v1663_v19  ;;  %v1715_v16 = vcombine.high %v1656_v24, %v1663_v19 }
 0x31a   : > { %v2064_v30 = vpop.f32.mrf.mxu0 }
 0x31b   : > { %v1623_v38 = vadd.f32 %v2102_v58, %v1558_v46  ;;  %v2104_v63 = vpop.f32.mrf.mxu1  ;;  %v2065_v13 = vadd.f32 %v2064_v30, %v2063_v14  ;;  %v1670_v21 = vrot.slane %v1644_v50, %v3106_v29  ;;  %v1724_v33 = vrot.slane %v1714_v54, %v2880_v4  ;;  %v3237_v14 = vld [vmem:[#allocation19_spill] sm:$0xff] }
 0x31c   : > { %v2066_v37 = vpop.f32.mrf.mxu0  ;;  %v1731_v22 = vrot.slane %v1715_v16, %v2880_v4  ;;  %v2105_v42 = vadd.f32 %v2104_v63, %v2103_v0 }
 0x31d   : > { %v1645_v40 = vadd.f32 %v1623_v38, %v2899_v52  ;;  %v2106_v27 = vpop.f32.mrf.mxu1  ;;  %v1563_v51 = vadd.f32 %v2065_v13, %v3098_v17 }
 0x31e   : > { %v2067_v5 = vpop.f32.mrf.mxu0 }
 0x31f   : > { %v1677_v7 = vrot.slane %v1645_v40, %v3106_v29  ;;  %v2068_v47 = vadd.f32 %v2067_v5, %v2066_v37  ;;  %v2107_v41 = vpop.f32.mrf.mxu1  ;;  %v1628_v8 = vadd.f32 %v2105_v42, %v1563_v51 }
 0x320   : > { %v2069_v15 = vpop.f32.mrf.mxu0  ;;  %v2108_v48 = vadd.f32 %v2107_v41, %v2106_v27 }
 0x321   : > { %v1716_v6 = vcombine.low %v1670_v21, %v1677_v7  ;;  %v1717_v20 = vcombine.high %v1670_v21, %v1677_v7  ;;  %v1566_v56 = vadd.f32 %v2068_v47, %v3098_v17  ;;  %v2109_v52 = vpop.f32.mrf.mxu1  ;;  %v1646_v53 = vadd.f32 %v1628_v8, %v2907_v60 }
 0x322   : > { %v2070_v49 = vpop.f32.mrf.mxu0 }
 0x323   : > { %v1738_v25 = vrot.slane %v1716_v6, %v2880_v4  ;;  %v1745_v45 = vrot.slane %v1717_v20, %v2880_v4  ;;  %v1631_v28 = vadd.f32 %v2108_v48, %v1566_v56  ;;  %v2071_v12 = vadd.f32 %v2070_v49, %v2069_v15  ;;  %v2110_v11 = vpop.f32.mrf.mxu1 }
 0x324   : > { %v2072_v34 = vpop.f32.mrf.mxu0  ;;  %v2111_v31 = vadd.f32 %v2110_v11, %v2109_v52  ;;  %v1684_v1 = vrot.slane %v1646_v53, %v3106_v29 }
 0x325   : > { %v1746_v43 = vcombine.low %v1724_v33, %v1738_v25  ;;  %v1747_v44 = vcombine.high %v1724_v33, %v1738_v25  ;;  %v1748_v10 = vcombine.low %v1731_v22, %v1745_v45  ;;  %v1749_v9 = vcombine.high %v1731_v22, %v1745_v45  ;;  %v2112_v55 = vpop.f32.mrf.mxu1 }
 0x326   : > { %v1571_v32 = vadd.f32 %v2071_v12, %v3098_v17  ;;  %v2073_v23 = vpop.f32.mrf.mxu0  ;;  %v1647_v18 = vadd.f32 %v1631_v28, %v2909_v61 }
 0x327   : > { %1794 = vst [vmem:[%s3123_s16] sm:$0xff] %v1746_v43  ;;  %1795 = vst [vmem:[%s3123_s16 + $0x8] sm:$0xff] %v1747_v44  ;;  %v2074_v26 = vadd.f32 %v2073_v23, %v2072_v34  ;;  %v2113_v57 = vpop.f32.mrf.mxu1 }
 0x328   : > { %1796 = vst [vmem:[%s3123_s16 + $0x10] sm:$0xff] %v1748_v10  ;;  %1797 = vst [vmem:[%s3123_s16 + $0x18] sm:$0xff] %v1749_v9  ;;  %v1636_v39 = vadd.f32 %v2111_v31, %v1571_v32  ;;  %v2114_v62 = vadd.f32 %v2113_v57, %v2112_v55  ;;  %v1691_v3 = vrot.slane %v1647_v18, %v3106_v29 }
 0x329   : > { %v1574_v35 = vadd.f32 %v2074_v26, %v3098_v17 }
 0x32a   : > { %v1648_v59 = vadd.f32 %v1636_v39, %v2915_v2  ;;  %v1750_v61 = vcombine.low %v1684_v1, %v1691_v3  ;;  %v1751_v58 = vcombine.high %v1684_v1, %v1691_v3 }
 0x32b   : > { %v1639_v36 = vadd.f32 %v2114_v62, %v1574_v35 }
 0x32c   : > { %v1698_v0 = vrot.slane %v1648_v59, %v3106_v29  ;;  %v1760_v2 = vrot.slane %v1750_v61, %v2880_v4  ;;  %v1767_v30 = vrot.slane %v1751_v58, %v2880_v4 }
 0x32d   : > { %v1649_v46 = vadd.f32 %v1639_v36, %v3237_v14 }
 0x32f   : > { %v1705_v19 = vrot.slane %v1649_v46, %v3106_v29 }
 0x331   : > { %v1752_v60 = vcombine.low %v1698_v0, %v1705_v19  ;;  %v1753_v17 = vcombine.high %v1698_v0, %v1705_v19 }
 0x333   : > { %v1774_v50 = vrot.slane %v1752_v60, %v2880_v4  ;;  %v1781_v38 = vrot.slane %v1753_v17, %v2880_v4 }
 0x335   : > { %v1782_v29 = vcombine.low %v1760_v2, %v1774_v50  ;;  %v1783_v63 = vcombine.high %v1760_v2, %v1774_v50  ;;  %v1784_v24 = vcombine.low %v1767_v30, %v1781_v38  ;;  %v1785_v13 = vcombine.high %v1767_v30, %v1781_v38 }
 0x337   : > { %1798 = vst [vmem:[%s3123_s16 + $0x20] sm:$0xff] %v1782_v29  ;;  %1799 = vst [vmem:[%s3123_s16 + $0x28] sm:$0xff] %v1783_v63 }
 0x338   : > { %1800 = vst [vmem:[%s3123_s16 + $0x30] sm:$0xff] %v1784_v24  ;;  %1801 = vst [vmem:[%s3123_s16 + $0x38] sm:$0xff] %v1785_v13 }
 0x339   : > { %2547 = shalt.err (!%p2544_p2)
}
 0x33a   : > { %s2548_s13 = scalar_lea.hbm %s3147_s24, 1024  ;;  %s2552_s19 = scalar_lea.hbm %s3204_s8, 2048 }
 0x33b   : > { %p2549_p13 = scmp.ne.s32.totalorder %s3147_s24, %s2548_s13  ;;  %p2553_p5 = scmp.lt.s32.totalorder %s3147_s24, %s3204_s8 }
 0x33c   : > { %p2554_p12 = scmp.lt.s32.totalorder %s2552_s19, %s2548_s13 }
 0x33d   : > { %p2550_p11 = pnand %p2549_p13, %p3238_p7 }
 0x33e   : > { %p2555_p3 = por %p2554_p12, %p2553_p5 }
 0x33f   : > { %p2551_p0 = pneg %p2550_p11 }
 0x341   : > { %p2556_p10 = pnand %p2555_p3, %p2551_p0 }
 0x343   : > { %2559 = shalt.err (!%p2556_p10)
}
 0x344   : > { %s2629_s15 = smov 512   ;;  %s2630_s17 = smov 1024  }
 0x345   : > { %s2631_s2 = smov 32  }
 0x346   : > { %2137 = dma.vmem_to_hbm [thread:$0]  (%p3238_p7), %s3149_s26, 1024, %s3147_s24, %s1803_s9, %s2629_s15, %s2630_s17, %s2631_s2  }
 0x347 PF: > { %s1831_s20 = sand.u32 1, %s2598_s27   ;;  %p3239_p1 = scmp.ne.s32.totalorder %s3216_s12, 0 }
 0x348   : > { %p3240_p9 = scmp.ge.s32.totalorder %s2610_s30, 2  ;;  %s1832_s22 = scalar_lea.sflag [#allocation4], %s1831_s20 }
 0x34a   : > { %p2160_p4 = pnand %p3240_p9, %p3239_p1 }
 0x34c   : > { %p2161_p8 = pneg %p2160_p4 }
 0x34e   : > { %2593 = dma.done.wait (%p2161_p8), %s1832_s22, 1024  }
 0x34f   : > { %2595 = vsyncadd (%p2161_p8), %s1832_s22, 4294966272  ;;  %p24_p6 = scmp.ge.s32.totalorder %s2773_s18, 4   ;;  %s3241_s27 = smov %s2602_s28 }
 0x350   : > { %s3242_s28 = smov %s2606_s29  ;;  %s3243_s29 = smov %s2793_s23 }
 0x351   : > { %s3244_s30 = smov %s2773_s18  ;;  %26 = sbr.rel (!%p24_p6) target bundleno = 11 (0xb), region = 117 }
 0x356   :  { %1837 = vsyncpa [#allocation3], 1 }
 0x357   :  { %1839 = vsyncpa [#allocation3 + $0x1], 1 }
 0x358   :  { %1840 = vsyncpa [#allocation6], 1 }
 0x359   :  { %1841 = vsyncpa [#allocation9], 1 }
 0x35a   :  { %1842 = vsyncpa [#allocation12], 1 }
 0x35b   :  { %1843 = vsyncpa [#allocation4], 1 }
 0x35c   :  { %1845 = vsyncpa [#allocation4 + $0x1], 1 }

</bundles_post_ra>
